<compile_context>
chip_gen: v7x
topology: tpu7x:2x2x1
jax: 0.10.0
libtpu: 0.0.40
codegen_flags: <defaults>
</compile_context>

<pallas_src>
import functools
from typing import NamedTuple

import jax
import jax.numpy as jnp
from jax import lax
from jax.experimental import pallas as pl
from jax.experimental.pallas import tpu as pltpu


class Config(NamedTuple):
    hidden_size: int
    num_heads: int
    num_kv_heads: int
    head_dim: int
    intermediate_size: int
    vocab_size: int
    num_layers: int
    rms_norm_eps: float
    rope_theta: float


# ----------------------------- tiling helpers -----------------------------

def _fit(dim, target):
    """Largest tile <= target that divides dim; falls back to the full dim."""
    if dim <= target:
        return dim
    t = target
    while t >= 8:
        if dim % t == 0:
            return t
        t //= 2
    return dim


_MATMUL_PARAMS = pltpu.CompilerParams(
    dimension_semantics=("parallel", "parallel", "arbitrary"))
_ROW_PARAMS = pltpu.CompilerParams(dimension_semantics=("parallel",))


# ----------------------------- Pallas kernels -----------------------------

def _matmul_kernel(x_ref, w_ref, o_ref, acc_ref):
    @pl.when(pl.program_id(2) == 0)
    def _():
        acc_ref[...] = jnp.zeros_like(acc_ref)

    acc_ref[...] += jnp.dot(x_ref[...], w_ref[...],
                            preferred_element_type=jnp.float32)

    @pl.when(pl.program_id(2) == pl.num_programs(2) - 1)
    def _():
        o_ref[...] = acc_ref[...].astype(o_ref.dtype)


def _matmul_bias_kernel(x_ref, w_ref, b_ref, o_ref, acc_ref):
    @pl.when(pl.program_id(2) == 0)
    def _():
        acc_ref[...] = jnp.zeros_like(acc_ref)

    acc_ref[...] += jnp.dot(x_ref[...], w_ref[...],
                            preferred_element_type=jnp.float32)

    @pl.when(pl.program_id(2) == pl.num_programs(2) - 1)
    def _():
        o_ref[...] = (acc_ref[...] + b_ref[...].astype(jnp.float32)).astype(o_ref.dtype)


def _silu_mul_matmul_kernel(g_ref, u_ref, w_ref, o_ref, acc_ref):
    # Fused SiluAndMul + down_proj: h = silu(gate) * up; acc += h @ W_down_tile.
    @pl.when(pl.program_id(2) == 0)
    def _():
        acc_ref[...] = jnp.zeros_like(acc_ref)

    g = g_ref[...].astype(jnp.float32)
    u = u_ref[...].astype(jnp.float32)
    h = (g * jax.nn.sigmoid(g) * u).astype(w_ref.dtype)
    acc_ref[...] += jnp.dot(h, w_ref[...], preferred_element_type=jnp.float32)

    @pl.when(pl.program_id(2) == pl.num_programs(2) - 1)
    def _():
        o_ref[...] = acc_ref[...].astype(o_ref.dtype)


def _rmsnorm_kernel(x_ref, w_ref, o_ref, *, eps):
    x = x_ref[...].astype(jnp.float32)
    var = jnp.mean(x * x, axis=-1, keepdims=True)
    o_ref[...] = (x * lax.rsqrt(var + eps)
                  * w_ref[...].astype(jnp.float32)).astype(o_ref.dtype)


def _add_rmsnorm_kernel(x_ref, r_ref, w_ref, o_ref, res_ref, *, eps):
    # vLLM fused residual RMSNorm: s = x + residual; new_residual = s; out = rmsnorm(s)
    s = x_ref[...].astype(jnp.float32) + r_ref[...].astype(jnp.float32)
    res_ref[...] = s.astype(res_ref.dtype)
    var = jnp.mean(s * s, axis=-1, keepdims=True)
    o_ref[...] = (s * lax.rsqrt(var + eps)
                  * w_ref[...].astype(jnp.float32)).astype(o_ref.dtype)


def _attn_kernel(q_ref, k_ref, v_ref, o_ref, *, num_heads, rep, head_dim):
    # q_ref: (tq, nh*hd) pre-scaled + roped; k_ref/v_ref: (T, nkv*hd); o_ref: (tq, nh*hd).
    # GQA: query head h uses kv head h // rep via in-kernel slicing (no jnp.repeat in HBM).
    tq = q_ref.shape[0]
    t_kv = k_ref.shape[0]
    q_start = pl.program_id(0) * tq
    row = lax.broadcasted_iota(jnp.int32, (tq, t_kv), 0) + q_start
    col = lax.broadcasted_iota(jnp.int32, (tq, t_kv), 1)
    mask = col <= row

    for h in range(num_heads):
        kv = h // rep
        qh = q_ref[:, h * head_dim:(h + 1) * head_dim]
        kh = k_ref[:, kv * head_dim:(kv + 1) * head_dim]
        vh = v_ref[:, kv * head_dim:(kv + 1) * head_dim]
        s = lax.dot_general(qh, kh, (((1,), (1,)), ((), ())),
                            preferred_element_type=jnp.float32)      # (tq, T)
        s = jnp.where(mask, s, jnp.float32(-1e30))
        m = jnp.max(s, axis=-1, keepdims=True)
        p = jnp.exp(s - m)
        l = jnp.sum(p, axis=-1, keepdims=True)
        p = p * pl.reciprocal(l, approx=True)
        o = jnp.dot(p.astype(vh.dtype), vh, preferred_element_type=jnp.float32)
        o_ref[:, h * head_dim:(h + 1) * head_dim] = o.astype(o_ref.dtype)


# ----------------------------- wrappers ------------------------------------

def linear(x, w_t, b=None, *, tm=256, tn=256, tk=512):
    """x: (T, K); w_t: (K, N) pre-transposed; b: (N,) or None (no zero-bias materialized)."""
    T, K = x.shape
    N = w_t.shape[1]
    tm, tn, tk = _fit(T, tm), _fit(N, tn), _fit(K, tk)
    grid = (T // tm, N // tn, K // tk)
    x_spec = pl.BlockSpec((tm, tk), lambda i, j, k: (i, k))
    w_spec = pl.BlockSpec((tk, tn), lambda i, j, k: (k, j))
    o_spec = pl.BlockSpec((tm, tn), lambda i, j, k: (i, j))
    scratch = [pltpu.VMEM((tm, tn), jnp.float32)]
    out_shape = jax.ShapeDtypeStruct((T, N), x.dtype)
    if b is None:
        return pl.pallas_call(
            _matmul_kernel, grid=grid,
            in_specs=[x_spec, w_spec], out_specs=o_spec, out_shape=out_shape,
            scratch_shapes=scratch, compiler_params=_MATMUL_PARAMS,
        )(x, w_t)
    b_spec = pl.BlockSpec((1, tn), lambda i, j, k: (0, j))
    return pl.pallas_call(
        _matmul_bias_kernel, grid=grid,
        in_specs=[x_spec, w_spec, b_spec], out_specs=o_spec, out_shape=out_shape,
        scratch_shapes=scratch, compiler_params=_MATMUL_PARAMS,
    )(x, w_t, b.reshape(1, N))


def silu_mul_down(gate_up, w_down_t, *, tm=256, tn=256, tk=512):
    """gate_up: (T, 2I); w_down_t: (I, H) -> (T, H). SiluAndMul fused into down_proj."""
    T = gate_up.shape[0]
    I, H = w_down_t.shape
    tm, tn, tk = _fit(T, tm), _fit(H, tn), _fit(I, tk)
    k_blocks = I // tk
    grid = (T // tm, H // tn, k_blocks)
    g_spec = pl.BlockSpec((tm, tk), lambda i, j, k: (i, k))
    u_spec = pl.BlockSpec((tm, tk), lambda i, j, k: (i, k + k_blocks))
    w_spec = pl.BlockSpec((tk, tn), lambda i, j, k: (k, j))
    o_spec = pl.BlockSpec((tm, tn), lambda i, j, k: (i, j))
    return pl.pallas_call(
        _silu_mul_matmul_kernel, grid=grid,
        in_specs=[g_spec, u_spec, w_spec], out_specs=o_spec,
        out_shape=jax.ShapeDtypeStruct((T, H), gate_up.dtype),
        scratch_shapes=[pltpu.VMEM((tm, tn), jnp.float32)],
        compiler_params=_MATMUL_PARAMS,
    )(gate_up, gate_up, w_down_t)


def rmsnorm(x, w, eps, *, tm=256):
    T, H = x.shape
    tm = _fit(T, tm)
    x_spec = pl.BlockSpec((tm, H), lambda i: (i, 0))
    w_spec = pl.BlockSpec((1, H), lambda i: (0, 0))
    return pl.pallas_call(
        functools.partial(_rmsnorm_kernel, eps=eps), grid=(T // tm,),
        in_specs=[x_spec, w_spec], out_specs=x_spec,
        out_shape=jax.ShapeDtypeStruct((T, H), x.dtype),
        compiler_params=_ROW_PARAMS,
    )(x, w.reshape(1, H))


def add_rmsnorm(x, residual, w, eps, *, tm=256):
    T, H = x.shape
    tm = _fit(T, tm)
    x_spec = pl.BlockSpec((tm, H), lambda i: (i, 0))
    w_spec = pl.BlockSpec((1, H), lambda i: (0, 0))
    out, new_res = pl.pallas_call(
        functools.partial(_add_rmsnorm_kernel, eps=eps), grid=(T // tm,),
        in_specs=[x_spec, x_spec, w_spec], out_specs=(x_spec, x_spec),
        out_shape=(jax.ShapeDtypeStruct((T, H), x.dtype),
                   jax.ShapeDtypeStruct((T, H), x.dtype)),
        input_output_aliases={1: 1},   # new residual reuses residual's buffer
        compiler_params=_ROW_PARAMS,
    )(x, residual, w.reshape(1, H))
    return out, new_res


def attention(q, k, v, *, num_heads, num_kv_heads, head_dim, tq=256):
    """q: (T, nh*hd) roped & pre-scaled; k/v: (T, nkv*hd) (k roped). Causal prefill."""
    # TODO(synk): full flash-style KV tiling + paged KV cache (vLLM AttentionMetadata) are not
    #             implemented; KV is kept whole per q-tile and attention runs as causal prefill.
    T = q.shape[0]
    rep = num_heads // num_kv_heads
    tq = _fit(T, tq)
    q_spec = pl.BlockSpec((tq, num_heads * head_dim), lambda i: (i, 0))
    kv_spec = pl.BlockSpec((T, num_kv_heads * head_dim), lambda i: (0, 0))
    return pl.pallas_call(
        functools.partial(_attn_kernel, num_heads=num_heads, rep=rep, head_dim=head_dim),
        grid=(T // tq,),
        in_specs=[q_spec, kv_spec, kv_spec], out_specs=q_spec,
        out_shape=jax.ShapeDtypeStruct((T, num_heads * head_dim), q.dtype),
        compiler_params=_ROW_PARAMS,
    )(q, k, v)


# ----------------------------- model glue (plain JAX) ----------------------

def rope_cos_sin(positions, head_dim, theta):
    half = head_dim // 2
    inv_freq = 1.0 / (theta ** (jnp.arange(half, dtype=jnp.float32) / half))
    freqs = positions.astype(jnp.float32)[:, None] * inv_freq[None, :]   # (T, half)
    return jnp.cos(freqs), jnp.sin(freqs)


def apply_rope(x, cos, sin, head_dim, scale=None):
    """Neox-style rotary embedding; cos/sin hoisted out of the layer loop."""
    T = x.shape[0]
    nh = x.shape[1] // head_dim
    half = head_dim // 2
    xs = x.reshape(T, nh, head_dim).astype(jnp.float32)
    x1, x2 = xs[..., :half], xs[..., half:]
    c, s = cos[:, None, :], sin[:, None, :]
    out = jnp.concatenate([x1 * c - x2 * s, x2 * c + x1 * s], axis=-1)
    if scale is not None:
        out = out * scale
    return out.reshape(T, nh * head_dim).astype(x.dtype)


def decoder_layer(h, residual, cos, sin, p, cfg):
    nh, nkv, hd = cfg.num_heads, cfg.num_kv_heads, cfg.head_dim
    eps = cfg.rms_norm_eps

    if residual is None:
        residual = h
        h = rmsnorm(h, p["input_ln"], eps)
    else:
        h, residual = add_rmsnorm(h, residual, p["input_ln"], eps)

    # --- self attention ---
    qkv = linear(h, p["qkv_w"], p["qkv_b"])
    q_size, kv_size = nh * hd, nkv * hd
    q = qkv[:, :q_size]
    k = qkv[:, q_size:q_size + kv_size]
    v = qkv[:, q_size + kv_size:]
    q = apply_rope(q, cos, sin, hd, scale=hd ** -0.5)   # scale folded into q (T*D muls)
    k = apply_rope(k, cos, sin, hd)

    attn_out = attention(q, k, v, num_heads=nh, num_kv_heads=nkv, head_dim=hd)
    h = linear(attn_out, p["o_w"])

    # --- MLP ---
    h, residual = add_rmsnorm(h, residual, p["post_ln"], eps)
    gate_up = linear(h, p["gate_up_w"])
    h = silu_mul_down(gate_up, p["down_w"])
    return h, residual


def tinyllm_forward(input_ids, positions, kv_caches, params, cfg):
    # TODO(synk): vLLM paged KV cache / AttentionMetadata has no clean Pallas analogue here;
    #             kv_caches are accepted but ignored and attention runs as causal prefill.
    del kv_caches
    h = jnp.take(params["embed"], input_ids, axis=0)          # embedding gather (glue)
    cos, sin = rope_cos_sin(positions, cfg.head_dim, cfg.rope_theta)  # hoisted RoPE tables
    residual = None
    for lp in params["layers"]:
        h, residual = decoder_layer(h, residual, cos, sin, lp, cfg)
    h, _ = add_rmsnorm(h, residual, params["final_norm"], cfg.rms_norm_eps)
    return h


# ----------------------------- parameter init ------------------------------

def init_params(key, cfg, dtype=jnp.bfloat16):
    H = cfg.hidden_size
    nh, nkv, hd = cfg.num_heads, cfg.num_kv_heads, cfg.head_dim
    I = cfg.intermediate_size
    V = cfg.vocab_size
    qkv_out = (nh + 2 * nkv) * hd

    def nrm(k, shape, scale=0.02):
        return (scale * jax.random.normal(k, shape, dtype=jnp.float32)).astype(dtype)

    keys = iter(jax.random.split(key, 2 + 5 * cfg.num_layers))
    params = {
        "embed": nrm(next(keys), (V, H)),
        "final_norm": jnp.ones((H,), dtype),
        "layers": [],
    }
    for _ in range(cfg.num_layers):
        # All projection weights stored pre-transposed to (K, N): no per-call transpose.
        params["layers"].append({
            "input_ln": jnp.ones((H,), dtype),
            "post_ln": jnp.ones((H,), dtype),
            "qkv_w": nrm(next(keys), (H, qkv_out)),
            "qkv_b": nrm(next(keys), (qkv_out,)),
            "o_w": nrm(next(keys), (nh * hd, H)),
            "gate_up_w": nrm(next(keys), (H, 2 * I)),
            "down_w": nrm(next(keys), (I, H)),
        })
    return params


# ----------------------------- main -----------------------------------------

if __name__ == "__main__":
    cfg = Config(
        hidden_size=64,
        num_heads=4,
        num_kv_heads=2,
        head_dim=16,            # hidden_size // num_heads
        intermediate_size=128,
        vocab_size=256,
        num_layers=2,
        rms_norm_eps=1e-6,
        rope_theta=10000.0,
    )
    T = 8  # number of tokens (vLLM flattens batch*seq into one token axis)

    key = jax.random.PRNGKey(0)
    k_ids, k_params = jax.random.split(key)
    input_ids = jax.random.randint(k_ids, (T,), 0, cfg.vocab_size, dtype=jnp.int32)
    positions = jnp.arange(T, dtype=jnp.int32)
    kv_caches = [None] * cfg.num_layers

    params = init_params(k_params, cfg)

    fwd = jax.jit(tinyllm_forward, static_argnames=("cfg",))
    hidden_states = fwd(input_ids, positions, kv_caches, params, cfg=cfg)
    hidden_states = jax.block_until_ready(hidden_states)

    assert hidden_states.shape == (T, cfg.hidden_size)
    assert bool(jnp.all(jnp.isfinite(hidden_states.astype(jnp.float32))))
    print("KERNEL_OK")
</pallas_src>

<mosaic_0001>
module attributes {stable_mosaic.version = 11 : i64} {
  func.func @_matmul_bias_kernel(%arg0: i32, %arg1: i32, %arg2: i32, %arg3: memref<8x64xbf16, #tpu.memory_space<vmem>>, %arg4: memref<64x128xbf16, #tpu.memory_space<vmem>>, %arg5: memref<1x128xbf16, #tpu.memory_space<vmem>>, %arg6: memref<8x128xbf16, #tpu.memory_space<vmem>>, %arg7: memref<8x128xf32, #tpu.memory_space<vmem>>) attributes {dimension_semantics = [#tpu.dimension_semantics<parallel>, #tpu.dimension_semantics<parallel>, #tpu.dimension_semantics<arbitrary>], iteration_bounds = array<i64: 1, 1, 1>, scalar_prefetch = 0 : i64, scratch_operands = 1 : i64, tpu.core_type = #tpu.core_type<tc>, window_params = [{transform_indices = @transform_0, window_bounds = array<i64: 8, 64>}, {transform_indices = @transform_1, window_bounds = array<i64: 64, 128>}, {transform_indices = @transform_2, window_bounds = array<i64: 1, 128>}, {transform_indices = @transform_3, window_bounds = array<i64: 8, 128>}]} {
    %c0_i32 = arith.constant 0 : i32
    %0 = arith.cmpi eq, %arg2, %c0_i32 : i32
    %1 = arith.extui %0 : i1 to i32
    %c0_i32_0 = arith.constant 0 : i32
    %2 = arith.cmpi ne, %1, %c0_i32_0 : i32
    scf.if %2 {
      %cst_10 = arith.constant 0.000000e+00 : f32
      %12 = vector.broadcast %cst_10 : f32 to vector<8x128xf32>
      %c0_11 = arith.constant 0 : index
      %c0_12 = arith.constant 0 : index
      %13 = vector.load %arg7[%c0_11, %c0_12] : memref<8x128xf32, #tpu.memory_space<vmem>>, vector<8x128xf32>
      tpu.vector_store %arg7[%c0_11, %c0_12], %12 {strides = array<i32>} : memref<8x128xf32, #tpu.memory_space<vmem>>, vector<8x128xf32>,
    } else {
    }
    %c0 = arith.constant 0 : index
    %c0_1 = arith.constant 0 : index
    %3 = vector.load %arg7[%c0, %c0_1] : memref<8x128xf32, #tpu.memory_space<vmem>>, vector<8x128xf32>
    %c0_2 = arith.constant 0 : index
    %c0_3 = arith.constant 0 : index
    %4 = vector.load %arg3[%c0_2, %c0_3] : memref<8x64xbf16, #tpu.memory_space<vmem>>, vector<8x64xbf16>
    %c0_4 = arith.constant 0 : index
    %c0_5 = arith.constant 0 : index
    %5 = vector.load %arg4[%c0_4, %c0_5] : memref<64x128xbf16, #tpu.memory_space<vmem>>, vector<64x128xbf16>
    %cst = arith.constant dense<0.000000e+00> : vector<8x128xf32>
    %6 = tpu.matmul %4, %5, %cst {dimension_numbers = #tpu.dot_dimension_numbers<[1], [0], [0], [1], [0, 0, 1, 1], [], []>} : vector<8x64xbf16>, vector<64x128xbf16>, vector<8x128xf32> -> vector<8x128xf32>
    %7 = arith.addf %3, %6 : vector<8x128xf32>
    %c0_6 = arith.constant 0 : index
    %c0_7 = arith.constant 0 : index
    %8 = vector.load %arg7[%c0_6, %c0_7] : memref<8x128xf32, #tpu.memory_space<vmem>>, vector<8x128xf32>
    tpu.vector_store %arg7[%c0_6, %c0_7], %7 {strides = array<i32>} : memref<8x128xf32, #tpu.memory_space<vmem>>, vector<8x128xf32>,
    %c0_i32_8 = arith.constant 0 : i32
    %9 = arith.cmpi eq, %arg2, %c0_i32_8 : i32
    %10 = arith.extui %9 : i1 to i32
    %c0_i32_9 = arith.constant 0 : i32
    %11 = arith.cmpi ne, %10, %c0_i32_9 : i32
    scf.if %11 {
      %c0_10 = arith.constant 0 : index
      %c0_11 = arith.constant 0 : index
      %12 = vector.load %arg7[%c0_10, %c0_11] : memref<8x128xf32, #tpu.memory_space<vmem>>, vector<8x128xf32>
      %c0_12 = arith.constant 0 : index
      %c0_13 = arith.constant 0 : index
      %13 = vector.load %arg5[%c0_12, %c0_13] : memref<1x128xbf16, #tpu.memory_space<vmem>>, vector<1x128xbf16>
      %14 = arith.extf %13 : vector<1x128xbf16> to vector<1x128xf32>
      %15 = vector.broadcast %14 : vector<1x128xf32> to vector<8x128xf32>
      %16 = arith.addf %12, %15 : vector<8x128xf32>
      %17 = arith.truncf %16 : vector<8x128xf32> to vector<8x128xbf16>
      %c0_14 = arith.constant 0 : index
      %c0_15 = arith.constant 0 : index
      %18 = vector.load %arg6[%c0_14, %c0_15] : memref<8x128xbf16, #tpu.memory_space<vmem>>, vector<8x128xbf16>
      tpu.vector_store %arg6[%c0_14, %c0_15], %17 {strides = array<i32>} : memref<8x128xbf16, #tpu.memory_space<vmem>>, vector<8x128xbf16>,
    } else {
    }
    return
  }
  func.func @transform_0(%arg0: i32, %arg1: i32, %arg2: i32) -> (i32, i32) {
    %c0_i32 = arith.constant 0 : i32
    return %arg0, %arg2 : i32, i32
  }
  func.func @transform_1(%arg0: i32, %arg1: i32, %arg2: i32) -> (i32, i32) {
    %c0_i32 = arith.constant 0 : i32
    return %arg2, %arg1 : i32, i32
  }
  func.func @transform_2(%arg0: i32, %arg1: i32, %arg2: i32) -> (i32, i32) {
    %c0_i32 = arith.constant 0 : i32
    %c0_i32_0 = arith.constant 0 : i32
    return %c0_i32, %arg1 : i32, i32
  }
  func.func @transform_3(%arg0: i32, %arg1: i32, %arg2: i32) -> (i32, i32) {
    %c0_i32 = arith.constant 0 : i32
    return %arg0, %arg1 : i32, i32
  }
}

module attributes {stable_mosaic.version = 11 : i64} {
  func.func @_rmsnorm_kernel(%arg0: i32, %arg1: memref<8x64xbf16, #tpu.memory_space<vmem>>, %arg2: memref<1x64xbf16, #tpu.memory_space<vmem>>, %arg3: memref<8x64xbf16, #tpu.memory_space<vmem>>) attributes {dimension_semantics = [#tpu.dimension_semantics<parallel>], iteration_bounds = array<i64: 1>, scalar_prefetch = 0 : i64, scratch_operands = 0 : i64, tpu.core_type = #tpu.core_type<tc>, window_params = [{transform_indices = @transform_0, window_bounds = array<i64: 8, 64>}, {pipeline_mode = #tpu.pipeline_mode<synchronous>, transform_indices = @transform_1, window_bounds = array<i64: 1, 64>}, {transform_indices = @transform_2, window_bounds = array<i64: 8, 64>}]} {
    %c0 = arith.constant 0 : index
    %c0_0 = arith.constant 0 : index
    %0 = vector.load %arg1[%c0, %c0_0] : memref<8x64xbf16, #tpu.memory_space<vmem>>, vector<8x64xbf16>
    %1 = arith.extf %0 : vector<8x64xbf16> to vector<8x64xf32>
    %2 = arith.mulf %1, %1 : vector<8x64xf32>
    %cst = arith.constant dense<0.000000e+00> : vector<8xf32>
    %3 = vector.multi_reduction <add>, %2, %cst [1] : vector<8x64xf32> to vector<8xf32>
    %4 = vector.shape_cast %3 : vector<8xf32> to vector<8x1xf32>
    %cst_1 = arith.constant 6.400000e+01 : f32
    %5 = vector.broadcast %cst_1 : f32 to vector<8x1xf32>
    %6 = arith.divf %4, %5 : vector<8x1xf32>
    %cst_2 = arith.constant 9.99999997E-7 : f32
    %7 = vector.broadcast %cst_2 : f32 to vector<8x1xf32>
    %8 = arith.addf %6, %7 : vector<8x1xf32>
    %9 = math.rsqrt %8 : vector<8x1xf32>
    %10 = vector.broadcast %9 : vector<8x1xf32> to vector<8x64xf32>
    %11 = arith.mulf %1, %10 : vector<8x64xf32>
    %c0_3 = arith.constant 0 : index
    %c0_4 = arith.constant 0 : index
    %12 = vector.load %arg2[%c0_3, %c0_4] : memref<1x64xbf16, #tpu.memory_space<vmem>>, vector<1x64xbf16>
    %13 = arith.extf %12 : vector<1x64xbf16> to vector<1x64xf32>
    %14 = vector.broadcast %13 : vector<1x64xf32> to vector<8x64xf32>
    %15 = arith.mulf %11, %14 : vector<8x64xf32>
    %16 = arith.truncf %15 : vector<8x64xf32> to vector<8x64xbf16>
    %c0_5 = arith.constant 0 : index
    %c0_6 = arith.constant 0 : index
    %17 = vector.load %arg3[%c0_5, %c0_6] : memref<8x64xbf16, #tpu.memory_space<vmem>>, vector<8x64xbf16>
    tpu.vector_store %arg3[%c0_5, %c0_6], %16 {strides = array<i32>} : memref<8x64xbf16, #tpu.memory_space<vmem>>, vector<8x64xbf16>,
    return
  }
  func.func @transform_0(%arg0: i32) -> (i32, i32) {
    %c0_i32 = arith.constant 0 : i32
    %c0_i32_0 = arith.constant 0 : i32
    return %arg0, %c0_i32 : i32, i32
  }
  func.func @transform_1(%arg0: i32) -> (i32, i32) {
    %c0_i32 = arith.constant 0 : i32
    %c0_i32_0 = arith.constant 0 : i32
    %c0_i32_1 = arith.constant 0 : i32
    return %c0_i32, %c0_i32_0 : i32, i32
  }
  func.func @transform_2(%arg0: i32) -> (i32, i32) {
    %c0_i32 = arith.constant 0 : i32
    %c0_i32_0 = arith.constant 0 : i32
    return %arg0, %c0_i32 : i32, i32
  }
}

module attributes {stable_mosaic.version = 11 : i64} {
  func.func @_matmul_kernel(%arg0: i32, %arg1: i32, %arg2: i32, %arg3: memref<8x64xbf16, #tpu.memory_space<vmem>>, %arg4: memref<64x64xbf16, #tpu.memory_space<vmem>>, %arg5: memref<8x64xbf16, #tpu.memory_space<vmem>>, %arg6: memref<8x64xf32, #tpu.memory_space<vmem>>) attributes {dimension_semantics = [#tpu.dimension_semantics<parallel>, #tpu.dimension_semantics<parallel>, #tpu.dimension_semantics<arbitrary>], iteration_bounds = array<i64: 1, 1, 1>, scalar_prefetch = 0 : i64, scratch_operands = 1 : i64, tpu.core_type = #tpu.core_type<tc>, window_params = [{transform_indices = @transform_0, window_bounds = array<i64: 8, 64>}, {transform_indices = @transform_1, window_bounds = array<i64: 64, 64>}, {transform_indices = @transform_2, window_bounds = array<i64: 8, 64>}]} {
    %c0_i32 = arith.constant 0 : i32
    %0 = arith.cmpi eq, %arg2, %c0_i32 : i32
    %1 = arith.extui %0 : i1 to i32
    %c0_i32_0 = arith.constant 0 : i32
    %2 = arith.cmpi ne, %1, %c0_i32_0 : i32
    scf.if %2 {
      %cst_10 = arith.constant 0.000000e+00 : f32
      %12 = vector.broadcast %cst_10 : f32 to vector<8x64xf32>
      %c0_11 = arith.constant 0 : index
      %c0_12 = arith.constant 0 : index
      %13 = vector.load %arg6[%c0_11, %c0_12] : memref<8x64xf32, #tpu.memory_space<vmem>>, vector<8x64xf32>
      tpu.vector_store %arg6[%c0_11, %c0_12], %12 {strides = array<i32>} : memref<8x64xf32, #tpu.memory_space<vmem>>, vector<8x64xf32>,
    } else {
    }
    %c0 = arith.constant 0 : index
    %c0_1 = arith.constant 0 : index
    %3 = vector.load %arg6[%c0, %c0_1] : memref<8x64xf32, #tpu.memory_space<vmem>>, vector<8x64xf32>
    %c0_2 = arith.constant 0 : index
    %c0_3 = arith.constant 0 : index
    %4 = vector.load %arg3[%c0_2, %c0_3] : memref<8x64xbf16, #tpu.memory_space<vmem>>, vector<8x64xbf16>
    %c0_4 = arith.constant 0 : index
    %c0_5 = arith.constant 0 : index
    %5 = vector.load %arg4[%c0_4, %c0_5] : memref<64x64xbf16, #tpu.memory_space<vmem>>, vector<64x64xbf16>
    %cst = arith.constant dense<0.000000e+00> : vector<8x64xf32>
    %6 = tpu.matmul %4, %5, %cst {dimension_numbers = #tpu.dot_dimension_numbers<[1], [0], [0], [1], [0, 0, 1, 1], [], []>} : vector<8x64xbf16>, vector<64x64xbf16>, vector<8x64xf32> -> vector<8x64xf32>
    %7 = arith.addf %3, %6 : vector<8x64xf32>
    %c0_6 = arith.constant 0 : index
    %c0_7 = arith.constant 0 : index
    %8 = vector.load %arg6[%c0_6, %c0_7] : memref<8x64xf32, #tpu.memory_space<vmem>>, vector<8x64xf32>
    tpu.vector_store %arg6[%c0_6, %c0_7], %7 {strides = array<i32>} : memref<8x64xf32, #tpu.memory_space<vmem>>, vector<8x64xf32>,
    %c0_i32_8 = arith.constant 0 : i32
    %9 = arith.cmpi eq, %arg2, %c0_i32_8 : i32
    %10 = arith.extui %9 : i1 to i32
    %c0_i32_9 = arith.constant 0 : i32
    %11 = arith.cmpi ne, %10, %c0_i32_9 : i32
    scf.if %11 {
      %c0_10 = arith.constant 0 : index
      %c0_11 = arith.constant 0 : index
      %12 = vector.load %arg6[%c0_10, %c0_11] : memref<8x64xf32, #tpu.memory_space<vmem>>, vector<8x64xf32>
      %13 = arith.truncf %12 : vector<8x64xf32> to vector<8x64xbf16>
      %c0_12 = arith.constant 0 : index
      %c0_13 = arith.constant 0 : index
      %14 = vector.load %arg5[%c0_12, %c0_13] : memref<8x64xbf16, #tpu.memory_space<vmem>>, vector<8x64xbf16>
      tpu.vector_store %arg5[%c0_12, %c0_13], %13 {strides = array<i32>} : memref<8x64xbf16, #tpu.memory_space<vmem>>, vector<8x64xbf16>,
    } else {
    }
    return
  }
  func.func @transform_0(%arg0: i32, %arg1: i32, %arg2: i32) -> (i32, i32) {
    %c0_i32 = arith.constant 0 : i32
    return %arg0, %arg2 : i32, i32
  }
  func.func @transform_1(%arg0: i32, %arg1: i32, %arg2: i32) -> (i32, i32) {
    %c0_i32 = arith.constant 0 : i32
    return %arg2, %arg1 : i32, i32
  }
  func.func @transform_2(%arg0: i32, %arg1: i32, %arg2: i32) -> (i32, i32) {
    %c0_i32 = arith.constant 0 : i32
    return %arg0, %arg1 : i32, i32
  }
}

module attributes {stable_mosaic.version = 11 : i64} {
  func.func @_attn_kernel(%arg0: i32, %arg1: memref<8x64xbf16, #tpu.memory_space<vmem>>, %arg2: memref<8x32xbf16, #tpu.memory_space<vmem>>, %arg3: memref<8x32xbf16, #tpu.memory_space<vmem>>, %arg4: memref<8x64xbf16, #tpu.memory_space<vmem>>) attributes {dimension_semantics = [#tpu.dimension_semantics<parallel>], iteration_bounds = array<i64: 1>, scalar_prefetch = 0 : i64, scratch_operands = 0 : i64, tpu.core_type = #tpu.core_type<tc>, window_params = [{transform_indices = @transform_0, window_bounds = array<i64: 8, 64>}, {pipeline_mode = #tpu.pipeline_mode<synchronous>, transform_indices = @transform_1, window_bounds = array<i64: 8, 32>}, {pipeline_mode = #tpu.pipeline_mode<synchronous>, transform_indices = @transform_2, window_bounds = array<i64: 8, 32>}, {transform_indices = @transform_3, window_bounds = array<i64: 8, 64>}]} {
    %c8_i32 = arith.constant 8 : i32
    %0 = arith.muli %arg0, %c8_i32 : i32
    %1 = tpu.iota {dimensions = array<i32: 0>} : vector<8x8xi32>
    %2 = vector.broadcast %0 : i32 to vector<8x8xi32>
    %3 = arith.addi %1, %2 : vector<8x8xi32>
    %4 = tpu.iota {dimensions = array<i32: 1>} : vector<8x8xi32>
    %5 = arith.cmpi sle, %4, %3 : vector<8x8xi32>
    %c0 = arith.constant 0 : index
    %c0_0 = arith.constant 0 : index
    %6 = vector.load %arg1[%c0, %c0_0] : memref<8x64xbf16, #tpu.memory_space<vmem>>, vector<8x16xbf16>
    %c0_1 = arith.constant 0 : index
    %c0_2 = arith.constant 0 : index
    %7 = vector.load %arg2[%c0_1, %c0_2] : memref<8x32xbf16, #tpu.memory_space<vmem>>, vector<8x16xbf16>
    %c0_3 = arith.constant 0 : index
    %c0_4 = arith.constant 0 : index
    %8 = vector.load %arg3[%c0_3, %c0_4] : memref<8x32xbf16, #tpu.memory_space<vmem>>, vector<8x16xbf16>
    %cst = arith.constant dense<0.000000e+00> : vector<8x8xf32>
    %9 = tpu.matmul %6, %7, %cst {dimension_numbers = #tpu.dot_dimension_numbers<[1], [1], [0], [0], [0, 0, 1, 0], [], []>} : vector<8x16xbf16>, vector<8x16xbf16>, vector<8x8xf32> -> vector<8x8xf32>
    %cst_5 = arith.constant -1.000000e+30 : f32
    %10 = vector.broadcast %cst_5 : f32 to vector<8x8xf32>
    %11 = arith.select %5, %9, %10 : vector<8x8xi1>, vector<8x8xf32>
    %cst_6 = arith.constant dense<0xFF800000> : vector<8xf32>
    %12 = vector.multi_reduction <maximumf>, %11, %cst_6 [1] : vector<8x8xf32> to vector<8xf32>
    %13 = vector.shape_cast %12 : vector<8xf32> to vector<8x1xf32>
    %14 = vector.broadcast %13 : vector<8x1xf32> to vector<8x8xf32>
    %15 = arith.subf %11, %14 : vector<8x8xf32>
    %16 = math.exp %15 : vector<8x8xf32>
    %cst_7 = arith.constant dense<0.000000e+00> : vector<8xf32>
    %17 = vector.multi_reduction <add>, %16, %cst_7 [1] : vector<8x8xf32> to vector<8xf32>
    %18 = vector.shape_cast %17 : vector<8xf32> to vector<8x1xf32>
    %19 = tpu.reciprocal %18 {approx = true} : vector<8x1xf32> -> vector<8x1xf32>
    %20 = vector.broadcast %19 : vector<8x1xf32> to vector<8x8xf32>
    %21 = arith.mulf %16, %20 : vector<8x8xf32>
    %22 = arith.truncf %21 : vector<8x8xf32> to vector<8x8xbf16>
    %cst_8 = arith.constant dense<0.000000e+00> : vector<8x16xf32>
    %23 = tpu.matmul %22, %8, %cst_8 {dimension_numbers = #tpu.dot_dimension_numbers<[1], [0], [0], [1], [0, 0, 1, 1], [], []>} : vector<8x8xbf16>, vector<8x16xbf16>, vector<8x16xf32> -> vector<8x16xf32>
    %24 = arith.truncf %23 : vector<8x16xf32> to vector<8x16xbf16>
    %c0_9 = arith.constant 0 : index
    %c0_10 = arith.constant 0 : index
    %25 = vector.load %arg4[%c0_9, %c0_10] : memref<8x64xbf16, #tpu.memory_space<vmem>>, vector<8x16xbf16>
    tpu.vector_store %arg4[%c0_9, %c0_10], %24 {strides = array<i32>} : memref<8x64xbf16, #tpu.memory_space<vmem>>, vector<8x16xbf16>,
    %c0_11 = arith.constant 0 : index
    %c16 = arith.constant 16 : index
    %26 = vector.load %arg1[%c0_11, %c16] : memref<8x64xbf16, #tpu.memory_space<vmem>>, vector<8x16xbf16>
    %c0_12 = arith.constant 0 : index
    %c0_13 = arith.constant 0 : index
    %27 = vector.load %arg2[%c0_12, %c0_13] : memref<8x32xbf16, #tpu.memory_space<vmem>>, vector<8x16xbf16>
    %c0_14 = arith.constant 0 : index
    %c0_15 = arith.constant 0 : index
    %28 = vector.load %arg3[%c0_14, %c0_15] : memref<8x32xbf16, #tpu.memory_space<vmem>>, vector<8x16xbf16>
    %cst_16 = arith.constant dense<0.000000e+00> : vector<8x8xf32>
    %29 = tpu.matmul %26, %27, %cst_16 {dimension_numbers = #tpu.dot_dimension_numbers<[1], [1], [0], [0], [0, 0, 1, 0], [], []>} : vector<8x16xbf16>, vector<8x16xbf16>, vector<8x8xf32> -> vector<8x8xf32>
    %cst_17 = arith.constant -1.000000e+30 : f32
    %30 = vector.broadcast %cst_17 : f32 to vector<8x8xf32>
    %31 = arith.select %5, %29, %30 : vector<8x8xi1>, vector<8x8xf32>
    %cst_18 = arith.constant dense<0xFF800000> : vector<8xf32>
    %32 = vector.multi_reduction <maximumf>, %31, %cst_18 [1] : vector<8x8xf32> to vector<8xf32>
    %33 = vector.shape_cast %32 : vector<8xf32> to vector<8x1xf32>
    %34 = vector.broadcast %33 : vector<8x1xf32> to vector<8x8xf32>
    %35 = arith.subf %31, %34 : vector<8x8xf32>
    %36 = math.exp %35 : vector<8x8xf32>
    %cst_19 = arith.constant dense<0.000000e+00> : vector<8xf32>
    %37 = vector.multi_reduction <add>, %36, %cst_19 [1] : vector<8x8xf32> to vector<8xf32>
    %38 = vector.shape_cast %37 : vector<8xf32> to vector<8x1xf32>
    %39 = tpu.reciprocal %38 {approx = true} : vector<8x1xf32> -> vector<8x1xf32>
    %40 = vector.broadcast %39 : vector<8x1xf32> to vector<8x8xf32>
    %41 = arith.mulf %36, %40 : vector<8x8xf32>
    %42 = arith.truncf %41 : vector<8x8xf32> to vector<8x8xbf16>
    %cst_20 = arith.constant dense<0.000000e+00> : vector<8x16xf32>
    %43 = tpu.matmul %42, %28, %cst_20 {dimension_numbers = #tpu.dot_dimension_numbers<[1], [0], [0], [1], [0, 0, 1, 1], [], []>} : vector<8x8xbf16>, vector<8x16xbf16>, vector<8x16xf32> -> vector<8x16xf32>
    %44 = arith.truncf %43 : vector<8x16xf32> to vector<8x16xbf16>
    %c0_21 = arith.constant 0 : index
    %c16_22 = arith.constant 16 : index
    %45 = vector.load %arg4[%c0_21, %c16_22] : memref<8x64xbf16, #tpu.memory_space<vmem>>, vector<8x16xbf16>
    tpu.vector_store %arg4[%c0_21, %c16_22], %44 {strides = array<i32>} : memref<8x64xbf16, #tpu.memory_space<vmem>>, vector<8x16xbf16>,
    %c0_23 = arith.constant 0 : index
    %c32 = arith.constant 32 : index
    %46 = vector.load %arg1[%c0_23, %c32] : memref<8x64xbf16, #tpu.memory_space<vmem>>, vector<8x16xbf16>
    %c0_24 = arith.constant 0 : index
    %c16_25 = arith.constant 16 : index
    %47 = vector.load %arg2[%c0_24, %c16_25] : memref<8x32xbf16, #tpu.memory_space<vmem>>, vector<8x16xbf16>
    %c0_26 = arith.constant 0 : index
    %c16_27 = arith.constant 16 : index
    %48 = vector.load %arg3[%c0_26, %c16_27] : memref<8x32xbf16, #tpu.memory_space<vmem>>, vector<8x16xbf16>
    %cst_28 = arith.constant dense<0.000000e+00> : vector<8x8xf32>
    %49 = tpu.matmul %46, %47, %cst_28 {dimension_numbers = #tpu.dot_dimension_numbers<[1], [1], [0], [0], [0, 0, 1, 0], [], []>} : vector<8x16xbf16>, vector<8x16xbf16>, vector<8x8xf32> -> vector<8x8xf32>
    %cst_29 = arith.constant -1.000000e+30 : f32
    %50 = vector.broadcast %cst_29 : f32 to vector<8x8xf32>
    %51 = arith.select %5, %49, %50 : vector<8x8xi1>, vector<8x8xf32>
    %cst_30 = arith.constant dense<0xFF800000> : vector<8xf32>
    %52 = vector.multi_reduction <maximumf>, %51, %cst_30 [1] : vector<8x8xf32> to vector<8xf32>
    %53 = vector.shape_cast %52 : vector<8xf32> to vector<8x1xf32>
    %54 = vector.broadcast %53 : vector<8x1xf32> to vector<8x8xf32>
    %55 = arith.subf %51, %54 : vector<8x8xf32>
    %56 = math.exp %55 : vector<8x8xf32>
    %cst_31 = arith.constant dense<0.000000e+00> : vector<8xf32>
    %57 = vector.multi_reduction <add>, %56, %cst_31 [1] : vector<8x8xf32> to vector<8xf32>
    %58 = vector.shape_cast %57 : vector<8xf32> to vector<8x1xf32>
    %59 = tpu.reciprocal %58 {approx = true} : vector<8x1xf32> -> vector<8x1xf32>
    %60 = vector.broadcast %59 : vector<8x1xf32> to vector<8x8xf32>
    %61 = arith.mulf %56, %60 : vector<8x8xf32>
    %62 = arith.truncf %61 : vector<8x8xf32> to vector<8x8xbf16>
    %cst_32 = arith.constant dense<0.000000e+00> : vector<8x16xf32>
    %63 = tpu.matmul %62, %48, %cst_32 {dimension_numbers = #tpu.dot_dimension_numbers<[1], [0], [0], [1], [0, 0, 1, 1], [], []>} : vector<8x8xbf16>, vector<8x16xbf16>, vector<8x16xf32> -> vector<8x16xf32>
    %64 = arith.truncf %63 : vector<8x16xf32> to vector<8x16xbf16>
    %c0_33 = arith.constant 0 : index
    %c32_34 = arith.constant 32 : index
    %65 = vector.load %arg4[%c0_33, %c32_34] : memref<8x64xbf16, #tpu.memory_space<vmem>>, vector<8x16xbf16>
    tpu.vector_store %arg4[%c0_33, %c32_34], %64 {strides = array<i32>} : memref<8x64xbf16, #tpu.memory_space<vmem>>, vector<8x16xbf16>,
    %c0_35 = arith.constant 0 : index
    %c48 = arith.constant 48 : index
    %66 = vector.load %arg1[%c0_35, %c48] : memref<8x64xbf16, #tpu.memory_space<vmem>>, vector<8x16xbf16>
    %c0_36 = arith.constant 0 : index
    %c16_37 = arith.constant 16 : index
    %67 = vector.load %arg2[%c0_36, %c16_37] : memref<8x32xbf16, #tpu.memory_space<vmem>>, vector<8x16xbf16>
    %c0_38 = arith.constant 0 : index
    %c16_39 = arith.constant 16 : index
    %68 = vector.load %arg3[%c0_38, %c16_39] : memref<8x32xbf16, #tpu.memory_space<vmem>>, vector<8x16xbf16>
    %cst_40 = arith.constant dense<0.000000e+00> : vector<8x8xf32>
    %69 = tpu.matmul %66, %67, %cst_40 {dimension_numbers = #tpu.dot_dimension_numbers<[1], [1], [0], [0], [0, 0, 1, 0], [], []>} : vector<8x16xbf16>, vector<8x16xbf16>, vector<8x8xf32> -> vector<8x8xf32>
    %cst_41 = arith.constant -1.000000e+30 : f32
    %70 = vector.broadcast %cst_41 : f32 to vector<8x8xf32>
    %71 = arith.select %5, %69, %70 : vector<8x8xi1>, vector<8x8xf32>
    %cst_42 = arith.constant dense<0xFF800000> : vector<8xf32>
    %72 = vector.multi_reduction <maximumf>, %71, %cst_42 [1] : vector<8x8xf32> to vector<8xf32>
    %73 = vector.shape_cast %72 : vector<8xf32> to vector<8x1xf32>
    %74 = vector.broadcast %73 : vector<8x1xf32> to vector<8x8xf32>
    %75 = arith.subf %71, %74 : vector<8x8xf32>
    %76 = math.exp %75 : vector<8x8xf32>
    %cst_43 = arith.constant dense<0.000000e+00> : vector<8xf32>
    %77 = vector.multi_reduction <add>, %76, %cst_43 [1] : vector<8x8xf32> to vector<8xf32>
    %78 = vector.shape_cast %77 : vector<8xf32> to vector<8x1xf32>
    %79 = tpu.reciprocal %78 {approx = true} : vector<8x1xf32> -> vector<8x1xf32>
    %80 = vector.broadcast %79 : vector<8x1xf32> to vector<8x8xf32>
    %81 = arith.mulf %76, %80 : vector<8x8xf32>
    %82 = arith.truncf %81 : vector<8x8xf32> to vector<8x8xbf16>
    %cst_44 = arith.constant dense<0.000000e+00> : vector<8x16xf32>
    %83 = tpu.matmul %82, %68, %cst_44 {dimension_numbers = #tpu.dot_dimension_numbers<[1], [0], [0], [1], [0, 0, 1, 1], [], []>} : vector<8x8xbf16>, vector<8x16xbf16>, vector<8x16xf32> -> vector<8x16xf32>
    %84 = arith.truncf %83 : vector<8x16xf32> to vector<8x16xbf16>
    %c0_45 = arith.constant 0 : index
    %c48_46 = arith.constant 48 : index
    %85 = vector.load %arg4[%c0_45, %c48_46] : memref<8x64xbf16, #tpu.memory_space<vmem>>, vector<8x16xbf16>
    tpu.vector_store %arg4[%c0_45, %c48_46], %84 {strides = array<i32>} : memref<8x64xbf16, #tpu.memory_space<vmem>>, vector<8x16xbf16>,
    return
  }
  func.func @transform_0(%arg0: i32) -> (i32, i32) {
    %c0_i32 = arith.constant 0 : i32
    %c0_i32_0 = arith.constant 0 : i32
    return %arg0, %c0_i32 : i32, i32
  }
  func.func @transform_1(%arg0: i32) -> (i32, i32) {
    %c0_i32 = arith.constant 0 : i32
    %c0_i32_0 = arith.constant 0 : i32
    %c0_i32_1 = arith.constant 0 : i32
    return %c0_i32, %c0_i32_0 : i32, i32
  }
  func.func @transform_2(%arg0: i32) -> (i32, i32) {
    %c0_i32 = arith.constant 0 : i32
    %c0_i32_0 = arith.constant 0 : i32
    %c0_i32_1 = arith.constant 0 : i32
    return %c0_i32, %c0_i32_0 : i32, i32
  }
  func.func @transform_3(%arg0: i32) -> (i32, i32) {
    %c0_i32 = arith.constant 0 : i32
    %c0_i32_0 = arith.constant 0 : i32
    return %arg0, %c0_i32 : i32, i32
  }
}

module attributes {stable_mosaic.version = 11 : i64} {
  func.func @_add_rmsnorm_kernel(%arg0: i32, %arg1: memref<8x64xbf16, #tpu.memory_space<vmem>>, %arg2: memref<8x64xbf16, #tpu.memory_space<vmem>>, %arg3: memref<1x64xbf16, #tpu.memory_space<vmem>>, %arg4: memref<8x64xbf16, #tpu.memory_space<vmem>>, %arg5: memref<8x64xbf16, #tpu.memory_space<vmem>>) attributes {dimension_semantics = [#tpu.dimension_semantics<parallel>], iteration_bounds = array<i64: 1>, scalar_prefetch = 0 : i64, scratch_operands = 0 : i64, tpu.core_type = #tpu.core_type<tc>, window_params = [{transform_indices = @transform_0, window_bounds = array<i64: 8, 64>}, {transform_indices = @transform_1, window_bounds = array<i64: 8, 64>}, {pipeline_mode = #tpu.pipeline_mode<synchronous>, transform_indices = @transform_2, window_bounds = array<i64: 1, 64>}, {transform_indices = @transform_3, window_bounds = array<i64: 8, 64>}, {transform_indices = @transform_4, window_bounds = array<i64: 8, 64>}]} {
    %c0 = arith.constant 0 : index
    %c0_0 = arith.constant 0 : index
    %0 = vector.load %arg1[%c0, %c0_0] : memref<8x64xbf16, #tpu.memory_space<vmem>>, vector<8x64xbf16>
    %1 = arith.extf %0 : vector<8x64xbf16> to vector<8x64xf32>
    %c0_1 = arith.constant 0 : index
    %c0_2 = arith.constant 0 : index
    %2 = vector.load %arg2[%c0_1, %c0_2] : memref<8x64xbf16, #tpu.memory_space<vmem>>, vector<8x64xbf16>
    %3 = arith.extf %2 : vector<8x64xbf16> to vector<8x64xf32>
    %4 = arith.addf %1, %3 : vector<8x64xf32>
    %5 = arith.truncf %4 : vector<8x64xf32> to vector<8x64xbf16>
    %c0_3 = arith.constant 0 : index
    %c0_4 = arith.constant 0 : index
    %6 = vector.load %arg5[%c0_3, %c0_4] : memref<8x64xbf16, #tpu.memory_space<vmem>>, vector<8x64xbf16>
    tpu.vector_store %arg5[%c0_3, %c0_4], %5 {strides = array<i32>} : memref<8x64xbf16, #tpu.memory_space<vmem>>, vector<8x64xbf16>,
    %7 = arith.mulf %4, %4 : vector<8x64xf32>
    %cst = arith.constant dense<0.000000e+00> : vector<8xf32>
    %8 = vector.multi_reduction <add>, %7, %cst [1] : vector<8x64xf32> to vector<8xf32>
    %9 = vector.shape_cast %8 : vector<8xf32> to vector<8x1xf32>
    %cst_5 = arith.constant 6.400000e+01 : f32
    %10 = vector.broadcast %cst_5 : f32 to vector<8x1xf32>
    %11 = arith.divf %9, %10 : vector<8x1xf32>
    %cst_6 = arith.constant 9.99999997E-7 : f32
    %12 = vector.broadcast %cst_6 : f32 to vector<8x1xf32>
    %13 = arith.addf %11, %12 : vector<8x1xf32>
    %14 = math.rsqrt %13 : vector<8x1xf32>
    %15 = vector.broadcast %14 : vector<8x1xf32> to vector<8x64xf32>
    %16 = arith.mulf %4, %15 : vector<8x64xf32>
    %c0_7 = arith.constant 0 : index
    %c0_8 = arith.constant 0 : index
    %17 = vector.load %arg3[%c0_7, %c0_8] : memref<1x64xbf16, #tpu.memory_space<vmem>>, vector<1x64xbf16>
    %18 = arith.extf %17 : vector<1x64xbf16> to vector<1x64xf32>
    %19 = vector.broadcast %18 : vector<1x64xf32> to vector<8x64xf32>
    %20 = arith.mulf %16, %19 : vector<8x64xf32>
    %21 = arith.truncf %20 : vector<8x64xf32> to vector<8x64xbf16>
    %c0_9 = arith.constant 0 : index
    %c0_10 = arith.constant 0 : index
    %22 = vector.load %arg4[%c0_9, %c0_10] : memref<8x64xbf16, #tpu.memory_space<vmem>>, vector<8x64xbf16>
    tpu.vector_store %arg4[%c0_9, %c0_10], %21 {strides = array<i32>} : memref<8x64xbf16, #tpu.memory_space<vmem>>, vector<8x64xbf16>,
    return
  }
  func.func @transform_0(%arg0: i32) -> (i32, i32) {
    %c0_i32 = arith.constant 0 : i32
    %c0_i32_0 = arith.constant 0 : i32
    return %arg0, %c0_i32 : i32, i32
  }
  func.func @transform_1(%arg0: i32) -> (i32, i32) {
    %c0_i32 = arith.constant 0 : i32
    %c0_i32_0 = arith.constant 0 : i32
    return %arg0, %c0_i32 : i32, i32
  }
  func.func @transform_2(%arg0: i32) -> (i32, i32) {
    %c0_i32 = arith.constant 0 : i32
    %c0_i32_0 = arith.constant 0 : i32
    %c0_i32_1 = arith.constant 0 : i32
    return %c0_i32, %c0_i32_0 : i32, i32
  }
  func.func @transform_3(%arg0: i32) -> (i32, i32) {
    %c0_i32 = arith.constant 0 : i32
    %c0_i32_0 = arith.constant 0 : i32
    return %arg0, %c0_i32 : i32, i32
  }
  func.func @transform_4(%arg0: i32) -> (i32, i32) {
    %c0_i32 = arith.constant 0 : i32
    %c0_i32_0 = arith.constant 0 : i32
    return %arg0, %c0_i32 : i32, i32
  }
}

module attributes {stable_mosaic.version = 11 : i64} {
  func.func @_matmul_kernel(%arg0: i32, %arg1: i32, %arg2: i32, %arg3: memref<8x64xbf16, #tpu.memory_space<vmem>>, %arg4: memref<64x256xbf16, #tpu.memory_space<vmem>>, %arg5: memref<8x256xbf16, #tpu.memory_space<vmem>>, %arg6: memref<8x256xf32, #tpu.memory_space<vmem>>) attributes {dimension_semantics = [#tpu.dimension_semantics<parallel>, #tpu.dimension_semantics<parallel>, #tpu.dimension_semantics<arbitrary>], iteration_bounds = array<i64: 1, 1, 1>, scalar_prefetch = 0 : i64, scratch_operands = 1 : i64, tpu.core_type = #tpu.core_type<tc>, window_params = [{transform_indices = @transform_0, window_bounds = array<i64: 8, 64>}, {transform_indices = @transform_1, window_bounds = array<i64: 64, 256>}, {transform_indices = @transform_2, window_bounds = array<i64: 8, 256>}]} {
    %c0_i32 = arith.constant 0 : i32
    %0 = arith.cmpi eq, %arg2, %c0_i32 : i32
    %1 = arith.extui %0 : i1 to i32
    %c0_i32_0 = arith.constant 0 : i32
    %2 = arith.cmpi ne, %1, %c0_i32_0 : i32
    scf.if %2 {
      %cst_10 = arith.constant 0.000000e+00 : f32
      %12 = vector.broadcast %cst_10 : f32 to vector<8x256xf32>
      %c0_11 = arith.constant 0 : index
      %c0_12 = arith.constant 0 : index
      %13 = vector.load %arg6[%c0_11, %c0_12] : memref<8x256xf32, #tpu.memory_space<vmem>>, vector<8x256xf32>
      tpu.vector_store %arg6[%c0_11, %c0_12], %12 {strides = array<i32>} : memref<8x256xf32, #tpu.memory_space<vmem>>, vector<8x256xf32>,
    } else {
    }
    %c0 = arith.constant 0 : index
    %c0_1 = arith.constant 0 : index
    %3 = vector.load %arg6[%c0, %c0_1] : memref<8x256xf32, #tpu.memory_space<vmem>>, vector<8x256xf32>
    %c0_2 = arith.constant 0 : index
    %c0_3 = arith.constant 0 : index
    %4 = vector.load %arg3[%c0_2, %c0_3] : memref<8x64xbf16, #tpu.memory_space<vmem>>, vector<8x64xbf16>
    %c0_4 = arith.constant 0 : index
    %c0_5 = arith.constant 0 : index
    %5 = vector.load %arg4[%c0_4, %c0_5] : memref<64x256xbf16, #tpu.memory_space<vmem>>, vector<64x256xbf16>
    %cst = arith.constant dense<0.000000e+00> : vector<8x256xf32>
    %6 = tpu.matmul %4, %5, %cst {dimension_numbers = #tpu.dot_dimension_numbers<[1], [0], [0], [1], [0, 0, 1, 1], [], []>} : vector<8x64xbf16>, vector<64x256xbf16>, vector<8x256xf32> -> vector<8x256xf32>
    %7 = arith.addf %3, %6 : vector<8x256xf32>
    %c0_6 = arith.constant 0 : index
    %c0_7 = arith.constant 0 : index
    %8 = vector.load %arg6[%c0_6, %c0_7] : memref<8x256xf32, #tpu.memory_space<vmem>>, vector<8x256xf32>
    tpu.vector_store %arg6[%c0_6, %c0_7], %7 {strides = array<i32>} : memref<8x256xf32, #tpu.memory_space<vmem>>, vector<8x256xf32>,
    %c0_i32_8 = arith.constant 0 : i32
    %9 = arith.cmpi eq, %arg2, %c0_i32_8 : i32
    %10 = arith.extui %9 : i1 to i32
    %c0_i32_9 = arith.constant 0 : i32
    %11 = arith.cmpi ne, %10, %c0_i32_9 : i32
    scf.if %11 {
      %c0_10 = arith.constant 0 : index
      %c0_11 = arith.constant 0 : index
      %12 = vector.load %arg6[%c0_10, %c0_11] : memref<8x256xf32, #tpu.memory_space<vmem>>, vector<8x256xf32>
      %13 = arith.truncf %12 : vector<8x256xf32> to vector<8x256xbf16>
      %c0_12 = arith.constant 0 : index
      %c0_13 = arith.constant 0 : index
      %14 = vector.load %arg5[%c0_12, %c0_13] : memref<8x256xbf16, #tpu.memory_space<vmem>>, vector<8x256xbf16>
      tpu.vector_store %arg5[%c0_12, %c0_13], %13 {strides = array<i32>} : memref<8x256xbf16, #tpu.memory_space<vmem>>, vector<8x256xbf16>,
    } else {
    }
    return
  }
  func.func @transform_0(%arg0: i32, %arg1: i32, %arg2: i32) -> (i32, i32) {
    %c0_i32 = arith.constant 0 : i32
    return %arg0, %arg2 : i32, i32
  }
  func.func @transform_1(%arg0: i32, %arg1: i32, %arg2: i32) -> (i32, i32) {
    %c0_i32 = arith.constant 0 : i32
    return %arg2, %arg1 : i32, i32
  }
  func.func @transform_2(%arg0: i32, %arg1: i32, %arg2: i32) -> (i32, i32) {
    %c0_i32 = arith.constant 0 : i32
    return %arg0, %arg1 : i32, i32
  }
}

module attributes {stable_mosaic.version = 11 : i64} {
  func.func @_silu_mul_matmul_kernel(%arg0: i32, %arg1: i32, %arg2: i32, %arg3: memref<8x128xbf16, #tpu.memory_space<vmem>>, %arg4: memref<8x128xbf16, #tpu.memory_space<vmem>>, %arg5: memref<128x64xbf16, #tpu.memory_space<vmem>>, %arg6: memref<8x64xbf16, #tpu.memory_space<vmem>>, %arg7: memref<8x64xf32, #tpu.memory_space<vmem>>) attributes {dimension_semantics = [#tpu.dimension_semantics<parallel>, #tpu.dimension_semantics<parallel>, #tpu.dimension_semantics<arbitrary>], iteration_bounds = array<i64: 1, 1, 1>, scalar_prefetch = 0 : i64, scratch_operands = 1 : i64, tpu.core_type = #tpu.core_type<tc>, window_params = [{transform_indices = @transform_0, window_bounds = array<i64: 8, 128>}, {transform_indices = @transform_1, window_bounds = array<i64: 8, 128>}, {transform_indices = @transform_2, window_bounds = array<i64: 128, 64>}, {transform_indices = @transform_3, window_bounds = array<i64: 8, 64>}]} {
    %c0_i32 = arith.constant 0 : i32
    %0 = arith.cmpi eq, %arg2, %c0_i32 : i32
    %1 = arith.extui %0 : i1 to i32
    %c0_i32_0 = arith.constant 0 : i32
    %2 = arith.cmpi ne, %1, %c0_i32_0 : i32
    scf.if %2 {
      %cst_13 = arith.constant 0.000000e+00 : f32
      %23 = vector.broadcast %cst_13 : f32 to vector<8x64xf32>
      %c0_14 = arith.constant 0 : index
      %c0_15 = arith.constant 0 : index
      %24 = vector.load %arg7[%c0_14, %c0_15] : memref<8x64xf32, #tpu.memory_space<vmem>>, vector<8x64xf32>
      tpu.vector_store %arg7[%c0_14, %c0_15], %23 {strides = array<i32>} : memref<8x64xf32, #tpu.memory_space<vmem>>, vector<8x64xf32>,
    } else {
    }
    %c0 = arith.constant 0 : index
    %c0_1 = arith.constant 0 : index
    %3 = vector.load %arg3[%c0, %c0_1] : memref<8x128xbf16, #tpu.memory_space<vmem>>, vector<8x128xbf16>
    %4 = arith.extf %3 : vector<8x128xbf16> to vector<8x128xf32>
    %c0_2 = arith.constant 0 : index
    %c0_3 = arith.constant 0 : index
    %5 = vector.load %arg4[%c0_2, %c0_3] : memref<8x128xbf16, #tpu.memory_space<vmem>>, vector<8x128xbf16>
    %6 = arith.extf %5 : vector<8x128xbf16> to vector<8x128xf32>
    %7 = arith.negf %4 : vector<8x128xf32>
    %8 = math.exp %7 : vector<8x128xf32>
    %cst = arith.constant 1.000000e+00 : f32
    %9 = vector.broadcast %cst : f32 to vector<8x128xf32>
    %10 = arith.addf %9, %8 : vector<8x128xf32>
    %11 = arith.divf %9, %10 : vector<8x128xf32>
    %12 = arith.mulf %4, %11 : vector<8x128xf32>
    %13 = arith.mulf %12, %6 : vector<8x128xf32>
    %14 = arith.truncf %13 : vector<8x128xf32> to vector<8x128xbf16>
    %c0_4 = arith.constant 0 : index
    %c0_5 = arith.constant 0 : index
    %15 = vector.load %arg7[%c0_4, %c0_5] : memref<8x64xf32, #tpu.memory_space<vmem>>, vector<8x64xf32>
    %c0_6 = arith.constant 0 : index
    %c0_7 = arith.constant 0 : index
    %16 = vector.load %arg5[%c0_6, %c0_7] : memref<128x64xbf16, #tpu.memory_space<vmem>>, vector<128x64xbf16>
    %cst_8 = arith.constant dense<0.000000e+00> : vector<8x64xf32>
    %17 = tpu.matmul %14, %16, %cst_8 {dimension_numbers = #tpu.dot_dimension_numbers<[1], [0], [0], [1], [0, 0, 1, 1], [], []>} : vector<8x128xbf16>, vector<128x64xbf16>, vector<8x64xf32> -> vector<8x64xf32>
    %18 = arith.addf %15, %17 : vector<8x64xf32>
    %c0_9 = arith.constant 0 : index
    %c0_10 = arith.constant 0 : index
    %19 = vector.load %arg7[%c0_9, %c0_10] : memref<8x64xf32, #tpu.memory_space<vmem>>, vector<8x64xf32>
    tpu.vector_store %arg7[%c0_9, %c0_10], %18 {strides = array<i32>} : memref<8x64xf32, #tpu.memory_space<vmem>>, vector<8x64xf32>,
    %c0_i32_11 = arith.constant 0 : i32
    %20 = arith.cmpi eq, %arg2, %c0_i32_11 : i32
    %21 = arith.extui %20 : i1 to i32
    %c0_i32_12 = arith.constant 0 : i32
    %22 = arith.cmpi ne, %21, %c0_i32_12 : i32
    scf.if %22 {
      %c0_13 = arith.constant 0 : index
      %c0_14 = arith.constant 0 : index
      %23 = vector.load %arg7[%c0_13, %c0_14] : memref<8x64xf32, #tpu.memory_space<vmem>>, vector<8x64xf32>
      %24 = arith.truncf %23 : vector<8x64xf32> to vector<8x64xbf16>
      %c0_15 = arith.constant 0 : index
      %c0_16 = arith.constant 0 : index
      %25 = vector.load %arg6[%c0_15, %c0_16] : memref<8x64xbf16, #tpu.memory_space<vmem>>, vector<8x64xbf16>
      tpu.vector_store %arg6[%c0_15, %c0_16], %24 {strides = array<i32>} : memref<8x64xbf16, #tpu.memory_space<vmem>>, vector<8x64xbf16>,
    } else {
    }
    return
  }
  func.func @transform_0(%arg0: i32, %arg1: i32, %arg2: i32) -> (i32, i32) {
    %c0_i32 = arith.constant 0 : i32
    return %arg0, %arg2 : i32, i32
  }
  func.func @transform_1(%arg0: i32, %arg1: i32, %arg2: i32) -> (i32, i32) {
    %c1_i32 = arith.constant 1 : i32
    %0 = arith.addi %arg2, %c1_i32 : i32
    %c0_i32 = arith.constant 0 : i32
    return %arg0, %0 : i32, i32
  }
  func.func @transform_2(%arg0: i32, %arg1: i32, %arg2: i32) -> (i32, i32) {
    %c0_i32 = arith.constant 0 : i32
    return %arg2, %arg1 : i32, i32
  }
  func.func @transform_3(%arg0: i32, %arg1: i32, %arg2: i32) -> (i32, i32) {
    %c0_i32 = arith.constant 0 : i32
    return %arg0, %arg1 : i32, i32
  }
}

module attributes {stable_mosaic.version = 11 : i64} {
  func.func @_add_rmsnorm_kernel(%arg0: i32, %arg1: memref<8x64xbf16, #tpu.memory_space<vmem>>, %arg2: memref<8x64xbf16, #tpu.memory_space<vmem>>, %arg3: memref<1x64xbf16, #tpu.memory_space<vmem>>, %arg4: memref<8x64xbf16, #tpu.memory_space<vmem>>, %arg5: memref<8x64xbf16, #tpu.memory_space<vmem>>) attributes {dimension_semantics = [#tpu.dimension_semantics<parallel>], iteration_bounds = array<i64: 1>, scalar_prefetch = 0 : i64, scratch_operands = 0 : i64, tpu.core_type = #tpu.core_type<tc>, window_params = [{transform_indices = @transform_0, window_bounds = array<i64: 8, 64>}, {transform_indices = @transform_1, window_bounds = array<i64: 8, 64>}, {pipeline_mode = #tpu.pipeline_mode<synchronous>, transform_indices = @transform_2, window_bounds = array<i64: 1, 64>}, {transform_indices = @transform_3, window_bounds = array<i64: 8, 64>}, {transform_indices = @transform_4, window_bounds = array<i64: 8, 64>}]} {
    %c0 = arith.constant 0 : index
    %c0_0 = arith.constant 0 : index
    %0 = vector.load %arg1[%c0, %c0_0] : memref<8x64xbf16, #tpu.memory_space<vmem>>, vector<8x64xbf16>
    %1 = arith.extf %0 : vector<8x64xbf16> to vector<8x64xf32>
    %c0_1 = arith.constant 0 : index
    %c0_2 = arith.constant 0 : index
    %2 = vector.load %arg2[%c0_1, %c0_2] : memref<8x64xbf16, #tpu.memory_space<vmem>>, vector<8x64xbf16>
    %3 = arith.extf %2 : vector<8x64xbf16> to vector<8x64xf32>
    %4 = arith.addf %1, %3 : vector<8x64xf32>
    %5 = arith.truncf %4 : vector<8x64xf32> to vector<8x64xbf16>
    %c0_3 = arith.constant 0 : index
    %c0_4 = arith.constant 0 : index
    %6 = vector.load %arg5[%c0_3, %c0_4] : memref<8x64xbf16, #tpu.memory_space<vmem>>, vector<8x64xbf16>
    tpu.vector_store %arg5[%c0_3, %c0_4], %5 {strides = array<i32>} : memref<8x64xbf16, #tpu.memory_space<vmem>>, vector<8x64xbf16>,
    %7 = arith.mulf %4, %4 : vector<8x64xf32>
    %cst = arith.constant dense<0.000000e+00> : vector<8xf32>
    %8 = vector.multi_reduction <add>, %7, %cst [1] : vector<8x64xf32> to vector<8xf32>
    %9 = vector.shape_cast %8 : vector<8xf32> to vector<8x1xf32>
    %cst_5 = arith.constant 6.400000e+01 : f32
    %10 = vector.broadcast %cst_5 : f32 to vector<8x1xf32>
    %11 = arith.divf %9, %10 : vector<8x1xf32>
    %cst_6 = arith.constant 9.99999997E-7 : f32
    %12 = vector.broadcast %cst_6 : f32 to vector<8x1xf32>
    %13 = arith.addf %11, %12 : vector<8x1xf32>
    %14 = math.rsqrt %13 : vector<8x1xf32>
    %15 = vector.broadcast %14 : vector<8x1xf32> to vector<8x64xf32>
    %16 = arith.mulf %4, %15 : vector<8x64xf32>
    %c0_7 = arith.constant 0 : index
    %c0_8 = arith.constant 0 : index
    %17 = vector.load %arg3[%c0_7, %c0_8] : memref<1x64xbf16, #tpu.memory_space<vmem>>, vector<1x64xbf16>
    %18 = arith.extf %17 : vector<1x64xbf16> to vector<1x64xf32>
    %19 = vector.broadcast %18 : vector<1x64xf32> to vector<8x64xf32>
    %20 = arith.mulf %16, %19 : vector<8x64xf32>
    %21 = arith.truncf %20 : vector<8x64xf32> to vector<8x64xbf16>
    %c0_9 = arith.constant 0 : index
    %c0_10 = arith.constant 0 : index
    %22 = vector.load %arg4[%c0_9, %c0_10] : memref<8x64xbf16, #tpu.memory_space<vmem>>, vector<8x64xbf16>
    tpu.vector_store %arg4[%c0_9, %c0_10], %21 {strides = array<i32>} : memref<8x64xbf16, #tpu.memory_space<vmem>>, vector<8x64xbf16>,
    return
  }
  func.func @transform_0(%arg0: i32) -> (i32, i32) {
    %c0_i32 = arith.constant 0 : i32
    %c0_i32_0 = arith.constant 0 : i32
    return %arg0, %c0_i32 : i32, i32
  }
  func.func @transform_1(%arg0: i32) -> (i32, i32) {
    %c0_i32 = arith.constant 0 : i32
    %c0_i32_0 = arith.constant 0 : i32
    return %arg0, %c0_i32 : i32, i32
  }
  func.func @transform_2(%arg0: i32) -> (i32, i32) {
    %c0_i32 = arith.constant 0 : i32
    %c0_i32_0 = arith.constant 0 : i32
    %c0_i32_1 = arith.constant 0 : i32
    return %c0_i32, %c0_i32_0 : i32, i32
  }
  func.func @transform_3(%arg0: i32) -> (i32, i32) {
    %c0_i32 = arith.constant 0 : i32
    %c0_i32_0 = arith.constant 0 : i32
    return %arg0, %c0_i32 : i32, i32
  }
  func.func @transform_4(%arg0: i32) -> (i32, i32) {
    %c0_i32 = arith.constant 0 : i32
    %c0_i32_0 = arith.constant 0 : i32
    return %arg0, %c0_i32 : i32, i32
  }
}

</mosaic_0001>

<bundles_post_ra>
// kernel: tinyllm_forward.15
= control target key start
LH: loop header
LB: loop body
LE: loop exit
PB: predicated region body
PF: predicated region fallthrough
CT: control target
= control target key end

     0   :  { %vm14_vm0 = vcmask 523264   ;;  %v25_v6 = vlaneseq  ;;  %vm31_vm1 = vcmask 519168   ;;  %s63_s0 = inlined_call_operand.vmem [shape: bf16[8,64], index: 0, kind: input, shape index: {}]   ;;  %s64_s1 = inlined_call_operand.vmem [shape: bf16[1,64], index: 1, kind: input, shape index: {}]   ;;  %s65_s2 = inlined_call_operand.vmem [shape: bf16[8,64], index: 2, kind: output, shape index: {}]  }
   0x1   :  { %v11_v0 = vld [vmem:[%s63_s0] sm:$0xf] }
   0x2   :  { %v12_v1 = vunpack.c.l.bf16 %v11_v0  ;;  %v26_v8 = vshrl.u32 %v25_v6, 7  ;;  %v23_v9 = vld [vmem:[%s64_s1] sm:$0x1] }
   0x3   :  { %v24_v10 = vunpack.c.l.bf16 %v23_v9 }
   0x4   :  { %v13_v2 = vmul.f32 %v12_v1, %v12_v1  ;;  %v27_v11 = vsub.s32 0, %v26_v8 }
   0x6   :  { %v15_v3 = vsel %vm14_vm0, %v13_v2, 0.0  ;;  %v28_v12 = vrot.slane %v24_v10, %v27_v11 }
   0x7   :  { %16 = vadd.xlane.f32.xlu0 %v15_v3 }
  0x94   :  { %v17_v4 = vpop.xlane.xlu0 %16 }
  0x95   :  { %v19_v5 = vmul.f32 0.015625, %v17_v4 }
  0x97   :  { %v20_v7 = vadd.f32 1e-06, %v19_v5 }
  0x99   :  { %37 = vrsqrt.f32 %v20_v7 }
  0xa3   :  { %v38_v13 = vpop.eup %37 }
  0xa4   :  { %v22_v14 = vmul.f32 %v38_v13, %v12_v1 }
  0xa6   :  { %v29_v15 = vmul.f32 %v28_v12, %v22_v14 }
  0xa8   :  { %v30_v16 = vpack.c.bf16 %v29_v15, %v29_v15 }
  0xaa   :  { %32 = vst.msk [vmem:[%s65_s2] sm:$0xf] %vm31_vm1, %v30_v16 }

// kernel: tinyllm_forward.16
= control target key start
LH: loop header
LB: loop body
LE: loop exit
PB: predicated region body
PF: predicated region fallthrough
CT: control target
= control target key end

     0   :  { %v145_v0 = vmov 0.0   ;;  %vm146_vm0 = vmmov 0   ;;  %vm54_vm1 = vcmask 523264   ;;  %v106_v6 = vlaneseq  ;;  %s188_s1 = inlined_call_operand.vmem [shape: bf16[64,128], index: 1, kind: input, shape index: {}]   ;;  %s189_s0 = inlined_call_operand.vmem [shape: bf16[8,64], index: 0, kind: input, shape index: {}]   ;;  %s190_s2 = inlined_call_operand.vmem [shape: bf16[1,128], index: 2, kind: input, shape index: {}]   ;;  %s191_s3 = inlined_call_operand.vmem [shape: bf16[8,128], index: 3, kind: output, shape index: {}]  }
   0x1   :  { %127 = vmatprep.subr.bf16.mxu0 %v145_v0  ;;  %v141_v1 = vld [vmem:[%s188_s1] sm:$0xff]   ;;  %135 = vmatprep.mubr.msk.bf16.mxu0 %vm146_vm0, %v145_v0  ;;  %v142_v2 = vld [vmem:[%s188_s1 + $0x8] sm:$0xff]   ;;  %v143_v3 = vld [vmem:[%s188_s1 + $0x10] sm:$0xff]  }
   0x2   :  { %128 = vmatpush3.bf16.msra.mxu0 %v141_v1  ;;  %v144_v4 = vld [vmem:[%s188_s1 + $0x18] sm:$0xff]   ;;  %v21_v5 = vld [vmem:[%s189_s0] sm:$0xf]  ;;  %v107_v7 = vshrl.u32 %v106_v6, 7 }
   0x3   :  { %129 = vmatprep.subr.bf16.mxu0 %v145_v0  ;;  %v104_v8 = vld [vmem:[%s190_s2] sm:$0x1] }
   0x4   :  { %v105_v9 = vunpack.c.l.bf16 %v104_v8  ;;  %v108_v10 = vsub.s32 0, %v107_v7 }
   0x6   :  { %130 = vmatpush3.bf16.msra.mxu0 %v142_v2  ;;  %v109_v11 = vrot.slane %v105_v9, %v108_v10 }
   0x7   :  { %131 = vmatprep.subr.bf16.mxu0 %v145_v0 }
   0xa   :  { %132 = vmatpush3.bf16.msra.mxu0 %v143_v3 }
   0xb   :  { %133 = vmatprep.subr.bf16.mxu0 %v145_v0 }
   0xe   :  { %134 = vmatpush3.bf16.msra.mxu0 %v144_v4 }
  0x11   :  { %136 = vmatmul.mubr.msk.bf16.vlgmr.msra.gmra.mrb[0].mxu0 %vm54_vm1, %v21_v5 }
  0xe4   :  { %v92_v12 = vpop.f32.mrb[0].mxu0 }
  0xe5   :  { %v110_v13 = vadd.f32 %v109_v11, %v92_v12  ;;  %v137_v14 = vpop.f32.mrb[1].mxu0 }
  0xe6   :  { %v95_v15 = vpop.f32.mrb[2].mxu0 }
  0xe7   :  { %v111_v16 = vpack.c.bf16 %v110_v13, %v110_v13  ;;  %v138_v17 = vpop.f32.mrb[3].mxu0 }
  0xe9   :  { %112 = vst [vmem:[%s191_s3] sm:$0xf] %v111_v16 }

// kernel: tinyllm_forward.18
= control target key start
LH: loop header
LB: loop body
LE: loop exit
PB: predicated region body
PF: predicated region fallthrough
CT: control target
= control target key end

     0   :  { %vm16_vm0 = vcmask 523264   ;;  %v137_v0 = vmov 0.0   ;;  %vm138_vm1 = vmmov 0   ;;  %vm103_vm2 = vcmask 519168   ;;  %s175_s1 = inlined_call_operand.vmem [shape: bf16[64,64], index: 1, kind: input, shape index: {}]   ;;  %s176_s0 = inlined_call_operand.vmem [shape: bf16[8,64], index: 0, kind: input, shape index: {}]   ;;  %s177_s2 = inlined_call_operand.vmem [shape: bf16[8,64], index: 2, kind: output, shape index: {}]  }
   0x1   :  { %119 = vmatprep.subr.bf16.mxu0 %v137_v0  ;;  %v133_v1 = vld [vmem:[%s175_s1] sm:$0xff]   ;;  %127 = vmatprep.mubr.msk.bf16.mxu0 %vm138_vm1, %v137_v0  ;;  %17 = vst.msk [vmem:[#allocation2] sm:$0xff] %vm16_vm0, %v137_v0  ;;  %v134_v2 = vld [vmem:[%s175_s1 + $0x8] sm:$0xff]   ;;  %v135_v3 = vld [vmem:[%s175_s1 + $0x10] sm:$0xff]  }
   0x2   :  { %120 = vmatpush3.bf16.msra.mxu0 %v133_v1  ;;  %v136_v4 = vld [vmem:[%s175_s1 + $0x18] sm:$0xff]   ;;  %v19_v5 = vld [vmem:[%s176_s0] sm:$0xf] }
   0x3   :  { %121 = vmatprep.subr.bf16.mxu0 %v137_v0 }
   0x6   :  { %122 = vmatpush3.bf16.msra.mxu0 %v134_v2 }
   0x7   :  { %123 = vmatprep.subr.bf16.mxu0 %v137_v0 }
   0x8   :  { %v18_v6 = vld [vmem:[#allocation2] sm:$0xff] }
   0xa   :  { %124 = vmatpush3.bf16.msra.mxu0 %v135_v3 }
   0xb   :  { %125 = vmatprep.subr.bf16.mxu0 %v137_v0 }
   0xe   :  { %126 = vmatpush3.bf16.msra.mxu0 %v136_v4 }
  0x11   :  { %128 = vmatmul.mubr.msk.bf16.vlgmr.msra.gmra.mrb[0].mxu0 %vm16_vm0, %v19_v5 }
  0xe4   :  { %v90_v7 = vpop.f32.mrb[0].mxu0 }
  0xe5   :  { %v96_v8 = vadd.f32 %v90_v7, %v18_v6  ;;  %v129_v9 = vpop.f32.mrb[1].mxu0 }
  0xe6   :  { %v93_v10 = vpop.f32.mrb[2].mxu0 }
  0xe7   :  { %97 = vst.msk [vmem:[#allocation2] sm:$0xff] %vm16_vm0, %v96_v8  ;;  %v130_v11 = vpop.f32.mrb[3].mxu0 }
  0xee   :  { %v101_v12 = vld [vmem:[#allocation2] sm:$0xff] }
  0xef   :  { %v102_v13 = vpack.c.bf16 %v101_v12, %v101_v12 }
  0xf1   :  { %104 = vst.msk [vmem:[%s177_s2] sm:$0xf] %vm103_vm2, %v102_v13 }

// kernel: tinyllm_forward.19
= control target key start
LH: loop header
LB: loop body
LE: loop exit
PB: predicated region body
PF: predicated region fallthrough
CT: control target
= control target key end

     0   :  { %vm22_vm0 = vcmask 519168   ;;  %vm25_vm1 = vcmask 523264   ;;  %v36_v10 = vlaneseq  ;;  %s95_s0 = inlined_call_operand.vmem [shape: bf16[8,64], index: 0, kind: input, shape index: {}]   ;;  %s96_s1 = inlined_call_operand.vmem [shape: bf16[8,64], index: 1, kind: input, shape index: {}, may-alias: {1,4}]   ;;  %s97_s4 = inlined_call_operand.vmem [shape: bf16[8,64], index: 4, kind: output, shape index: {1}, may-alias: {1,4}]   ;;  %s98_s2 = inlined_call_operand.vmem [shape: bf16[1,64], index: 2, kind: input, shape index: {}]   ;;  %s99_s3 = inlined_call_operand.vmem [shape: bf16[8,64], index: 3, kind: output, shape index: {0}]  }
   0x1   :  { %v16_v0 = vld [vmem:[%s95_s0] sm:$0xf] }
   0x2   :  { %v18_v1 = vld [vmem:[%s96_s1] sm:$0xf]  ;;  %v17_v2 = vunpack.c.l.bf16 %v16_v0  ;;  %v37_v12 = vshrl.u32 %v36_v10, 7 }
   0x3   :  { %v19_v3 = vunpack.c.l.bf16 %v18_v1  ;;  %v34_v13 = vld [vmem:[%s98_s2] sm:$0x1] }
   0x4   :  { %v35_v14 = vunpack.c.l.bf16 %v34_v13  ;;  %v38_v15 = vsub.s32 0, %v37_v12 }
   0x5   :  { %v20_v4 = vadd.f32 %v19_v3, %v17_v2 }
   0x6   :  { %v39_v16 = vrot.slane %v35_v14, %v38_v15 }
   0x7   :  { %v21_v5 = vpack.c.bf16 %v20_v4, %v20_v4  ;;  %v24_v6 = vmul.f32 %v20_v4, %v20_v4 }
   0x9   :  { %23 = vst.msk [vmem:[%s97_s4] sm:$0xf] %vm22_vm0, %v21_v5  ;;  %v26_v7 = vsel %vm25_vm1, %v24_v6, 0.0 }
   0xa   :  { %27 = vadd.xlane.f32.xlu0 %v26_v7 }
  0x97   :  { %v28_v8 = vpop.xlane.xlu0 %27 }
  0x98   :  { %v30_v9 = vmul.f32 0.015625, %v28_v8 }
  0x9a   :  { %v31_v11 = vadd.f32 1e-06, %v30_v9 }
  0x9c   :  { %51 = vrsqrt.f32 %v31_v11 }
  0xa6   :  { %v52_v17 = vpop.eup %51 }
  0xa7   :  { %v33_v18 = vmul.f32 %v52_v17, %v20_v4 }
  0xa9   :  { %v40_v19 = vmul.f32 %v39_v16, %v33_v18 }
  0xab   :  { %v41_v20 = vpack.c.bf16 %v40_v19, %v40_v19 }
  0xad   :  { %42 = vst.msk [vmem:[%s99_s3] sm:$0xf] %vm22_vm0, %v41_v20 }

// kernel: tinyllm_forward.20
= control target key start
LH: loop header
LB: loop body
LE: loop exit
PB: predicated region body
PF: predicated region fallthrough
CT: control target
= control target key end

     0   :  { %v160_v1 = vmov 0   ;;  %vm69_vm0 = vcmask 523264   ;;  %s206_s1 = inlined_call_operand.vmem [shape: bf16[64,256], index: 1, kind: input, shape index: {}]   ;;  %s207_s0 = inlined_call_operand.vmem [shape: bf16[8,64], index: 0, kind: input, shape index: {}]   ;;  %s208_s2 = inlined_call_operand.vmem [shape: bf16[8,256], index: 2, kind: output, shape index: {}]  }
   0x1   :  { %v148_v0 = vld [vmem:[%s206_s1 + $0x4] ss:$8 sps:$4 sm:$0xff]   ;;  %105 = vmatprep.mubr.bf16.mxu0 %v160_v1  ;;  %v150_v2 = vld [vmem:[%s206_s1] ss:$8 sps:$4 sm:$0xff]   ;;  %v151_v3 = vld [vmem:[%s206_s1 + $0x14] ss:$8 sps:$4 sm:$0xff]  }
   0x2   :  { %73 = vmatprep.subr.bf16.mxu0 %v148_v0  ;;  %v153_v4 = vld [vmem:[%s206_s1 + $0x10] ss:$8 sps:$4 sm:$0xff]   ;;  %v154_v5 = vld [vmem:[%s206_s1 + $0x24] ss:$8 sps:$4 sm:$0xff]   ;;  %v156_v6 = vld [vmem:[%s206_s1 + $0x20] ss:$8 sps:$4 sm:$0xff]  }
   0x3   :  { %74 = vmatpush1.bf16.msra.mxu0 %v150_v2  ;;  %v157_v7 = vld [vmem:[%s206_s1 + $0x34] ss:$8 sps:$4 sm:$0xff]   ;;  %v159_v8 = vld [vmem:[%s206_s1 + $0x30] ss:$8 sps:$4 sm:$0xff]   ;;  %v20_v9 = vld [vmem:[%s207_s0] sm:$0xf] }
   0x4   :  { %75 = vmatprep.subr.bf16.mxu0 %v151_v3 }
   0x7   :  { %76 = vmatpush1.bf16.msra.mxu0 %v153_v4 }
   0x8   :  { %77 = vmatprep.subr.bf16.mxu0 %v154_v5 }
   0xb   :  { %78 = vmatpush1.bf16.msra.mxu0 %v156_v6 }
   0xc   :  { %79 = vmatprep.subr.bf16.mxu0 %v157_v7 }
   0xf   :  { %80 = vmatpush1.bf16.msra.mxu0 %v159_v8 }
  0x12   :  { %144 = vmatmul.mubr.msk.bf16.vlgmr.msra.gmra.mrb[0].mxu0 %vm69_vm0, %v20_v9 }
  0xe5   :  { %v107_v10 = vpop.f32.mrb[0].mxu0 }
  0xe6   :  { %v109_v11 = vpop.f32.mrb[1].mxu0 }
  0xe7   :  { %v146_v12 = vpack.c.bf16 %v109_v11, %v107_v10  ;;  %v111_v13 = vpop.f32.mrb[2].mxu0 }
  0xe8   :  { %v112_v14 = vpop.f32.mrb[3].mxu0 }
  0xe9   :  { %131 = vst [vmem:[%s208_s2] sm:$0xff] %v146_v12 }

// kernel: tinyllm_forward.17
= control target key start
LH: loop header
LB: loop body
LE: loop exit
PB: predicated region body
PF: predicated region fallthrough
CT: control target
= control target key end

     0   :  { %vm26_vm0 = vcmask 130048   ;;  %v643_v0 = vmov 0.0   ;;  %vm644_vm1 = vmmov 0   ;;  %v16_v4 = vlaneseq  ;;  %s645_s18 = smov 112   ;;  %s646_s25 = smov 80   ;;  %s790_s1 = inlined_call_operand.vmem [shape: bf16[8,32], index: 1, kind: input, shape index: {}]   ;;  %s791_s0 = inlined_call_operand.vmem [shape: bf16[8,64], index: 0, kind: input, shape index: {}]   ;;  %s792_s2 = inlined_call_operand.vmem [shape: bf16[8,32], index: 2, kind: input, shape index: {}]   ;;  %s793_s3 = inlined_call_operand.vmem [shape: bf16[8,64], index: 3, kind: output, shape index: {}]  }
   0x1   :  { %564 = vmatprep.subr.bf16.mxu0 %v643_v0  ;;  %v24_v1 = vld [vmem:[%s790_s1] sm:$0xf]  ;;  %566 = vmatprep.mubr.msk.bf16.mxu0 %vm644_vm1, %v643_v0  ;;  %vm74_vm3 = vcmask 64512   ;;  %vm90_vm4 = vcmask 1043456   ;;  %s647_s30 = smov 96   ;;  %vm135_vm5 = vcmask 125952  }
   0x2   :  { %v31_v2 = vsel %vm26_vm0, %v24_v1, 0  ;;  %570 = vmatprep.subr.bf16.mxu1 %v643_v0  ;;  %572 = vmatprep.mubr.msk.bf16.mxu1 %vm644_vm1, %v643_v0  ;;  %v23_v3 = vld [vmem:[%s791_s0] sm:$0xf]  ;;  %v688_v5 = vshrl.u32 %v16_v4, 7  ;;  %v690_v6 = vand.u32 127, %v16_v4  ;;  %s649_s12 = smov 32  }
   0x3   :  { %565 = vmatpush3.bf16.xpose.msra.mxu0 %v31_v2  ;;  %v620_v13 = vld [vmem:[%s791_s0] ss:$0 sps:$4 sm:$0xff]   ;;  %s650_s13 = smov 48   ;;  %vm257_vm6 = vcmask 257152   ;;  %vm389_vm7 = vcmask 388352   ;;  %vm521_vm8 = vcmask 519552  }
   0x4   :  { %582 = vmatprep.subr.bf16.mxu0 %v643_v0  ;;  %vm22_vm2 = vcmp.le.s32.totalorder %v690_v6, %v688_v5  ;;  %143 = vrot.lane.b32.xlu1 %v620_v13, %s645_s18  ;;  %v621_v14 = vld [vmem:[%s790_s1] ss:$0 sps:$4 sm:$0xff]  }
   0x5   :  { %v622_v15 = vld [vmem:[%s790_s1] ss:$0 sps:$4 sm:$0xff]  }
   0x6   :  { %v624_v16 = vld [vmem:[%s791_s0] ss:$0 sps:$4 sm:$0xff]  }
   0x7   :  { %v25_v22 = vld [vmem:[%s792_s2] sm:$0xf] }
   0x8   :  { %270 = vrot.lane.b32.xlu1 %v621_v14, %s645_s18  ;;  %v92_v23 = vsel %vm90_vm4, %v25_v22, 0  ;;  %v623_v24 = vld [vmem:[%s791_s0] ss:$0 sps:$4 sm:$0xff]  }
   0x9   :  { %571 = vmatpush3.bf16.msra.mxu1 %v92_v23  ;;  %v138_v27 = vld [vmem:[%s790_s1] sm:$0xf] }
   0xa   :  { %567 = vmatmul.mubr.msk.bf16.vlgmr.msra.gmra.mrb[0].mxu0 %vm26_vm0, %v23_v3  ;;  %576 = vmatprep.subr.bf16.mxu1 %v643_v0  ;;  %v149_v31 = vsel %vm26_vm0, %v138_v27, 0  ;;  %v625_v13 = vld [vmem:[%s792_s2] ss:$0 sps:$4 sm:$0xff]  }
   0xb   :  { %584 = vmatprep.mubr.msk.bf16.mxu0 %vm644_vm1, %v643_v0  ;;  %v139_v14 = vld [vmem:[%s792_s2] sm:$0xf] }
   0xc   :  { %402 = vrot.lane.b32.xlu1 %v622_v15, %s645_s18  ;;  %v208_v15 = vsel %vm90_vm4, %v139_v14, 0 }
   0xd   :  { %583 = vmatpush3.bf16.msra.mxu0 %v208_v15 }
   0xe   :  { %594 = vmatprep.subr.bf16.mxu0 %v643_v0 }
  0x10   :  { %397 = vrot.lane.b32.xlu1 %v624_v16, %s646_s25  ;;  %v626_v16 = vld [vmem:[%s792_s2] ss:$0 sps:$4 sm:$0xff]   ;;  %s648_s2 = smov 16  }
  0x76   :  { %v144_v29 = vpop.permute.xlu1 %143 }
  0x7a   :  { %v271_v32 = vpop.permute.xlu1 %270 }
  0x7b   :  { %v276_v33 = vsel %vm26_vm0, %v271_v32, 0 }
  0x7e   :  { %v403_v34 = vpop.permute.xlu1 %402 }
  0x7f   :  { %v408_v36 = vsel %vm26_vm0, %v403_v34, 0 }
  0x82   :  { %v398_v37 = vpop.permute.xlu1 %397 }
  0xdd   :  { %v67_v7 = vpop.f32.mrb[0].mxu0 }
  0xde   :  { %v73_v8 = vsel %vm22_vm2, %v67_v7, -1e+30  ;;  %v568_v9 = vpop.f32.mrb[1].mxu0 }
  0xdf   :  { %v70_v10 = vpop.f32.mrb[2].mxu0  ;;  %v75_v11 = vsel %vm74_vm3, %v73_v8, -inf }
  0xe0   :  { %76 = vmax.xlane.f32.xlu0 %v75_v11  ;;  %v569_v12 = vpop.f32.mrb[3].mxu0 }
 0x16d   :  { %v77_v17 = vpop.xlane.xlu0 %76 }
 0x16e   :  { %v78_v18 = vsub.f32 %v73_v8, %v77_v17 }
 0x170   :  { %v79_v19 = vmul.f32 1.442695, %v78_v18 }
 0x172   :  { %627 = vpow2.f32 %v79_v19 }
 0x17c   :  { %v628_v20 = vpop.eup %627 }
 0x17d   :  { %v81_v21 = vsel %vm74_vm3, %v628_v20, 0.0 }
 0x17e   :  { %82 = vadd.xlane.f32.xlu0 %v81_v21 }
 0x194   :  { %265 = vrot.lane.b32.xlu0 %v623_v24, %s647_s30 }
 0x20b   :  { %v83_v25 = vpop.xlane.xlu0 %82 }
 0x20c   :  { %629 = vrcp.f32 %v83_v25 }
 0x20f   :  { %v266_v35 = vpop.permute.xlu0 %265 }
 0x216   :  { %v630_v26 = vpop.eup %629 }
 0x217   :  { %v85_v28 = vmul.f32 %v630_v26, %v628_v20 }
 0x219   :  { %v86_v30 = vpack.c.bf16 %v85_v28, %v85_v28 }
 0x21b   :  { %573 = vmatmul.mubr.msk.bf16.vlgmr.msra.gmra.mrb[0].mxu1 %vm74_vm3, %v86_v30 }
 0x21c   :  { %577 = vmatpush3.bf16.xpose.msra.mxu1 %v149_v31  ;;  %578 = vmatprep.mubr.msk.bf16.mxu1 %vm644_vm1, %v643_v0 }
 0x21d   :  { %588 = vmatprep.subr.bf16.mxu1 %v643_v0 }
 0x223   :  { %579 = vmatmul.mubr.msk.bf16.vlgmr.msra.gmra.mrb[4].mxu1 %vm26_vm0, %v144_v29 }
 0x224   :  { %589 = vmatpush3.bf16.xpose.msra.mxu1 %v276_v33  ;;  %590 = vmatprep.mubr.msk.bf16.mxu1 %vm644_vm1, %v643_v0 }
 0x225   :  { %600 = vmatprep.subr.bf16.mxu1 %v643_v0 }
 0x22b   :  { %591 = vmatmul.mubr.msk.bf16.vlgmr.msra.gmra.mrb[8].mxu1 %vm26_vm0, %v266_v35 }
 0x22c   :  { %601 = vmatpush3.bf16.xpose.msra.mxu1 %v408_v36  ;;  %602 = vmatprep.mubr.msk.bf16.mxu1 %vm644_vm1, %v643_v0 }
 0x233   :  { %603 = vmatmul.mubr.msk.bf16.vlgmr.msra.gmra.mrb[12].mxu1 %vm26_vm0, %v398_v37 }
 0x2ee   :  { %v128_v38 = vpop.f32.mrb[0].mxu1 }
 0x2ef   :  { %v134_v39 = vpack.c.bf16 %v128_v38, %v128_v38  ;;  %v574_v40 = vpop.f32.mrb[1].mxu1 }
 0x2f0   :  { %v131_v41 = vpop.f32.mrb[2].mxu1 }
 0x2f1   :  { %136 = vst.msk [vmem:[%s793_s3] sm:$0xf] %vm135_vm5, %v134_v39  ;;  %v575_v42 = vpop.f32.mrb[3].mxu1 }
 0x2f6   :  { %v185_v43 = vpop.f32.mrb[4].mxu1 }
 0x2f7   :  { %v191_v44 = vsel %vm22_vm2, %v185_v43, -1e+30  ;;  %v580_v45 = vpop.f32.mrb[5].mxu1 }
 0x2f8   :  { %v188_v46 = vpop.f32.mrb[6].mxu1  ;;  %v192_v47 = vsel %vm74_vm3, %v191_v44, -inf }
 0x2f9   :  { %193 = vmax.xlane.f32.xlu1 %v192_v47  ;;  %v581_v48 = vpop.f32.mrb[7].mxu1 }
 0x2fe   :  { %v312_v49 = vpop.f32.mrb[8].mxu1 }
 0x2ff   :  { %v318_v50 = vsel %vm22_vm2, %v312_v49, -1e+30  ;;  %v592_v51 = vpop.f32.mrb[9].mxu1 }
 0x300   :  { %v315_v52 = vpop.f32.mrb[10].mxu1  ;;  %v319_v53 = vsel %vm74_vm3, %v318_v50, -inf }
 0x301   :  { %320 = vmax.xlane.f32.xlu0 %v319_v53  ;;  %v593_v54 = vpop.f32.mrb[11].mxu1 }
 0x306   :  { %v444_v55 = vpop.f32.mrb[12].mxu1 }
 0x307   :  { %v450_v56 = vsel %vm22_vm2, %v444_v55, -1e+30  ;;  %v604_v57 = vpop.f32.mrb[13].mxu1 }
 0x308   :  { %v447_v58 = vpop.f32.mrb[14].mxu1  ;;  %v451_v59 = vsel %vm74_vm3, %v450_v56, -inf }
 0x309   :  { %452 = vmax.xlane.f32.xlu1 %v451_v59  ;;  %v605_v60 = vpop.f32.mrb[15].mxu1 }
 0x386   :  { %v194_v61 = vpop.xlane.xlu1 %193 }
 0x387   :  { %v195_v62 = vsub.f32 %v191_v44, %v194_v61 }
 0x389   :  { %v196_v63 = vmul.f32 1.442695, %v195_v62 }
 0x38b   :  { %631 = vpow2.f32 %v196_v63 }
 0x38e   :  { %v321_v1 = vpop.xlane.xlu0 %320 }
 0x38f   :  { %v322_v2 = vsub.f32 %v318_v50, %v321_v1 }
 0x391   :  { %v323_v3 = vmul.f32 1.442695, %v322_v2 }
 0x393   :  { %633 = vpow2.f32 %v323_v3 }
 0x395   :  { %v632_v4 = vpop.eup %631 }
 0x396   :  { %v453_v7 = vpop.xlane.xlu1 %452  ;;  %v198_v8 = vsel %vm74_vm3, %v632_v4, 0.0 }
 0x397   :  { %v454_v5 = vsub.f32 %v450_v56, %v453_v7  ;;  %199 = vadd.xlane.f32.xlu1 %v198_v8 }
 0x399   :  { %v455_v6 = vmul.f32 1.442695, %v454_v5 }
 0x39b   :  { %635 = vpow2.f32 %v455_v6 }
 0x39d   :  { %v634_v9 = vpop.eup %633 }
 0x39e   :  { %v325_v10 = vsel %vm74_vm3, %v634_v9, 0.0 }
 0x39f   :  { %326 = vadd.xlane.f32.xlu1 %v325_v10 }
 0x3a5   :  { %v636_v11 = vpop.eup %635 }
 0x3a6   :  { %v457_v12 = vsel %vm74_vm3, %v636_v11, 0.0 }
 0x3a7   :  { %458 = vadd.xlane.f32.xlu0 %v457_v12 }
 0x3b0   :  { %334 = vrot.lane.b32.xlu1 %v625_v13, %s645_s18 }
 0x3bd   :  { %466 = vrot.lane.b32.xlu0 %v626_v16, %s645_s18 }
 0x424   :  { %v200_v17 = vpop.xlane.xlu1 %199 }
 0x425   :  { %637 = vrcp.f32 %v200_v17 }
 0x42c   :  { %v327_v18 = vpop.xlane.xlu1 %326 }
 0x42d   :  { %639 = vrcp.f32 %v327_v18 }
 0x42f   :  { %v638_v19 = vpop.eup %637 }
 0x430   :  { %v202_v20 = vmul.f32 %v638_v19, %v632_v4  ;;  %v335_v21 = vpop.permute.xlu1 %334 }
 0x431   :  { %v340_v22 = vsel %vm90_vm4, %v335_v21, 0 }
 0x432   :  { %v203_v23 = vpack.c.bf16 %v202_v20, %v202_v20 }
 0x434   :  { %v459_v24 = vpop.xlane.xlu0 %458  ;;  %585 = vmatmul.mubr.msk.bf16.vlgmr.msra.gmra.mrb[4].mxu0 %vm74_vm3, %v203_v23 }
 0x435   :  { %641 = vrcp.f32 %v459_v24  ;;  %595 = vmatpush3.bf16.msra.mxu0 %v340_v22  ;;  %596 = vmatprep.mubr.msk.bf16.mxu0 %vm644_vm1, %v643_v0 }
 0x436   :  { %606 = vmatprep.subr.bf16.mxu0 %v643_v0 }
 0x437   :  { %v640_v25 = vpop.eup %639 }
 0x438   :  { %v329_v26 = vmul.f32 %v640_v25, %v634_v9  ;;  %v467_v27 = vpop.permute.xlu0 %466 }
 0x439   :  { %v472_v28 = vsel %vm90_vm4, %v467_v27, 0 }
 0x43a   :  { %v330_v29 = vpack.c.bf16 %v329_v26, %v329_v26 }
 0x43c   :  { %597 = vmatmul.mubr.msk.bf16.vlgmr.msra.gmra.mrb[8].mxu0 %vm74_vm3, %v330_v29 }
 0x43d   :  { %607 = vmatpush3.bf16.msra.mxu0 %v472_v28  ;;  %608 = vmatprep.mubr.msk.bf16.mxu0 %vm644_vm1, %v643_v0 }
 0x43f   :  { %v642_v30 = vpop.eup %641 }
 0x440   :  { %v461_v31 = vmul.f32 %v642_v30, %v636_v11 }
 0x442   :  { %v462_v32 = vpack.c.bf16 %v461_v31, %v461_v31 }
 0x444   :  { %609 = vmatmul.mubr.msk.bf16.vlgmr.msra.gmra.mrb[12].mxu0 %vm74_vm3, %v462_v32 }
 0x507   :  { %v244_v33 = vpop.f32.mrb[4].mxu0 }
 0x508   :  { %v545_v34 = vpack.c.bf16 %v244_v33, %v244_v33  ;;  %v586_v35 = vpop.f32.mrb[5].mxu0 }
 0x509   :  { %v247_v36 = vpop.f32.mrb[6].mxu0 }
 0x50a   :  { %254 = vrot.lane.b32.xlu1 %v545_v34, %s648_s2  ;;  %v587_v37 = vpop.f32.mrb[7].mxu0 }
 0x50f   :  { %v376_v38 = vpop.f32.mrb[8].mxu0 }
 0x510   :  { %v546_v39 = vpack.c.bf16 %v376_v38, %v376_v38  ;;  %v598_v40 = vpop.f32.mrb[9].mxu0 }
 0x511   :  { %v379_v41 = vpop.f32.mrb[10].mxu0 }
 0x512   :  { %386 = vrot.lane.b32.xlu1 %v546_v39, %s649_s12  ;;  %v599_v42 = vpop.f32.mrb[11].mxu0 }
 0x517   :  { %v508_v0 = vpop.f32.mrb[12].mxu0 }
 0x518   :  { %v547_v43 = vpack.c.bf16 %v508_v0, %v508_v0  ;;  %v610_v44 = vpop.f32.mrb[13].mxu0 }
 0x519   :  { %v511_v45 = vpop.f32.mrb[14].mxu0 }
 0x51a   :  { %518 = vrot.lane.b32.xlu0 %v547_v43, %s650_s13  ;;  %v611_v46 = vpop.f32.mrb[15].mxu0 }
 0x57c   :  { %v255_v47 = vpop.permute.xlu1 %254 }
 0x57d   :  { %258 = vst.msk [vmem:[%s793_s3] sm:$0xf] %vm257_vm6, %v255_v47 }
 0x584   :  { %v387_v48 = vpop.permute.xlu1 %386 }
 0x585   :  { %390 = vst.msk [vmem:[%s793_s3] sm:$0xf] %vm389_vm7, %v387_v48 }
 0x58c   :  { %v519_v49 = vpop.permute.xlu0 %518 }
 0x58d   :  { %522 = vst.msk [vmem:[%s793_s3] sm:$0xf] %vm521_vm8, %v519_v49 }

// kernel: tinyllm_forward.21
= control target key start
LH: loop header
LB: loop body
LE: loop exit
PB: predicated region body
PF: predicated region fallthrough
CT: control target
= control target key end

     0   :  { %vm36_vm0 = vcmask 523264   ;;  %v229_v0 = vmov 0.0   ;;  %vm230_vm1 = vmmov 0   ;;  %vm164_vm2 = vcmask 519168   ;;  %s286_s2 = inlined_call_operand.vmem [shape: bf16[128,64], index: 2, kind: input, shape index: {}]   ;;  %s287_s0 = inlined_call_operand.vmem [shape: bf16[8,256], index: 0, kind: input, shape index: {}, may-alias: {0,1}]   ;;  %s288_s1 = inlined_call_operand.vmem [shape: bf16[8,256], index: 1, kind: input, shape index: {}, may-alias: {0,1}]   ;;  %s289_s3 = inlined_call_operand.vmem [shape: bf16[8,64], index: 3, kind: output, shape index: {}]  }
   0x1   :  { %195 = vmatprep.subr.bf16.mxu0 %v229_v0  ;;  %v217_v1 = vld [vmem:[%s286_s2] sm:$0xff]   ;;  %211 = vmatprep.mubr.msk.bf16.mxu0 %vm230_vm1, %v229_v0  ;;  %37 = vst.msk [vmem:[#allocation2] sm:$0xff] %vm36_vm0, %v229_v0  ;;  %v218_v2 = vld [vmem:[%s286_s2 + $0x8] sm:$0xff]   ;;  %v219_v3 = vld [vmem:[%s286_s2 + $0x10] sm:$0xff]  }
   0x2   :  { %196 = vmatpush3.bf16.msra.mxu0 %v217_v1  ;;  %v38_v4 = vld [vmem:[%s287_s0] sm:$0xf]  ;;  %v220_v6 = vld [vmem:[%s286_s2 + $0x18] sm:$0xff]   ;;  %v222_v9 = vld [vmem:[%s286_s2 + $0x28] sm:$0xff]  }
   0x3   :  { %197 = vmatprep.subr.bf16.mxu0 %v229_v0  ;;  %v39_v5 = vunpack.c.l.bf16 %v38_v4  ;;  %v221_v8 = vld [vmem:[%s286_s2 + $0x20] sm:$0xff]   ;;  %v223_v10 = vld [vmem:[%s286_s2 + $0x30] sm:$0xff]   ;;  %v224_v13 = vld [vmem:[%s286_s2 + $0x38] sm:$0xff]  }
   0x4   :  { %v176_v14 = vld [vmem:[%s288_s1 + $0x4] sm:$0xf] }
   0x5   :  { %v177_v7 = vmul.f32 -1.442695, %v39_v5  ;;  %v41_v15 = vunpack.c.l.bf16 %v176_v14 }
   0x6   :  { %198 = vmatpush3.bf16.msra.mxu0 %v218_v2 }
   0x7   :  { %199 = vmatprep.subr.bf16.mxu0 %v229_v0  ;;  %225 = vpow2.f32 %v177_v7 }
   0x8   :  { %v51_v20 = vld [vmem:[#allocation2] sm:$0xff] }
   0xa   :  { %200 = vmatpush3.bf16.msra.mxu0 %v219_v3 }
   0xb   :  { %201 = vmatprep.subr.bf16.mxu0 %v229_v0 }
   0xe   :  { %202 = vmatpush3.bf16.msra.mxu0 %v220_v6 }
   0xf   :  { %203 = vmatprep.subr.bf16.mxu0 %v229_v0 }
  0x11   :  { %v226_v11 = vpop.eup %225 }
  0x12   :  { %204 = vmatpush3.bf16.msra.mxu0 %v221_v8  ;;  %v45_v12 = vadd.f32 1.0, %v226_v11 }
  0x13   :  { %205 = vmatprep.subr.bf16.mxu0 %v229_v0 }
  0x14   :  { %227 = vrcp.f32 %v45_v12 }
  0x16   :  { %206 = vmatpush3.bf16.msra.mxu0 %v222_v9 }
  0x17   :  { %207 = vmatprep.subr.bf16.mxu0 %v229_v0 }
  0x1a   :  { %208 = vmatpush3.bf16.msra.mxu0 %v223_v10 }
  0x1b   :  { %209 = vmatprep.subr.bf16.mxu0 %v229_v0 }
  0x1e   :  { %210 = vmatpush3.bf16.msra.mxu0 %v224_v13  ;;  %v228_v16 = vpop.eup %227 }
  0x1f   :  { %v48_v17 = vmul.f32 %v228_v16, %v39_v5 }
  0x21   :  { %v49_v18 = vmul.f32 %v48_v17, %v41_v15 }
  0x23   :  { %v50_v19 = vpack.c.bf16 %v49_v18, %v49_v18 }
  0x25   :  { %212 = vmatmul.mubr.bf16.vlgmr.msra.gmra.mrb[0].mxu0 %v50_v19 }
  0xf8   :  { %v150_v21 = vpop.f32.mrb[0].mxu0 }
  0xf9   :  { %v156_v22 = vadd.f32 %v150_v21, %v51_v20  ;;  %v213_v23 = vpop.f32.mrb[1].mxu0 }
  0xfa   :  { %v153_v24 = vpop.f32.mrb[2].mxu0 }
  0xfb   :  { %158 = vst.msk [vmem:[#allocation2] sm:$0xff] %vm36_vm0, %v156_v22  ;;  %v214_v25 = vpop.f32.mrb[3].mxu0 }
 0x102   :  { %v162_v26 = vld [vmem:[#allocation2] sm:$0xff] }
 0x103   :  { %v163_v27 = vpack.c.bf16 %v162_v26, %v162_v26 }
 0x105   :  { %165 = vst.msk [vmem:[%s289_s3] sm:$0xf] %vm164_vm2, %v163_v27 }

// kernel: tinyllm_forward.29
= control target key start
LH: loop header
LB: loop body
LE: loop exit
PB: predicated region body
PF: predicated region fallthrough
CT: control target
= control target key end

     0   :  { %s141_s0 = inlined_call_operand.vmem [shape: bf16[8,64], index: 0, kind: input, shape index: {}]   ;;  %s142_s1 = inlined_call_operand.vmem [shape: bf16[8,64], index: 1, kind: input, shape index: {}, may-alias: {1,4}]   ;;  %s143_s2 = inlined_call_operand.vmem [shape: bf16[1,64], index: 2, kind: input, shape index: {}]   ;;  %s144_s3 = inlined_call_operand.hbm [shape: bf16[8,64], index: 3, kind: output, shape index: {0}]   ;;  %s145_s4 = inlined_call_operand.vmem [shape: bf16[8,64], index: 4, kind: output, shape index: {1}, may-alias: {1,4}]  }
   0x1   :  { %v17_v0 = vld [vmem:[%s141_s0] sm:$0xf] }
   0x2   :  { %v19_v1 = vld [vmem:[%s142_s1] sm:$0xf]  ;;  %v18_v2 = vunpack.c.l.bf16 %v17_v0 }
   0x3   :  { %v20_v3 = vunpack.c.l.bf16 %v19_v1 }
   0x4   :  { %10 = vsyncpa [#allocation3], 0  ;;  %vm26_vm0 = vcmask 523264   ;;  %vm23_vm1 = vcmask 519168   ;;  %v37_v10 = vlaneseq  ;;  %v35_v13 = vld [vmem:[%s143_s2] sm:$0x1] }
   0x5   :  { %v21_v4 = vadd.f32 %v20_v3, %v18_v2  ;;  %v36_v14 = vunpack.c.l.bf16 %v35_v13  ;;  %s89_s21 = smov [#allocation2]  }
   0x6   :  { %v38_v12 = vshrl.u32 %v37_v10, 7  ;;  %s50_s22 = sshll.u32 %s89_s21, 4  ;;  %s51_s22 = int_to_ptr.vmem [resolvable:$true] %s50_s22 }
   0x7   :  { %v25_v5 = vmul.f32 %v21_v4, %v21_v4  ;;  %v22_v7 = vpack.c.bf16 %v21_v4, %v21_v4  ;;  %p70_p1 = scmp.lt.s32.totalorder %s51_s22, %s51_s22 }
   0x8   :  { %v39_v15 = vsub.s32 0, %v38_v12 }
   0x9   :  { %v27_v6 = vsel %vm26_vm0, %v25_v5, 0.0  ;;  %24 = vst.msk [vmem:[%s145_s4] sm:$0xf] %vm23_vm1, %v22_v7  ;;  %s65_s4 = scalar_lea.vmem %s51_s22, 64 }
   0xa   :  { %28 = vadd.xlane.f32.xlu0 %v27_v6  ;;  %v40_v16 = vrot.slane %v36_v14, %v39_v15  ;;  %p66_p0 = scmp.ne.s32.totalorder %s51_s22, %s65_s4  ;;  %p71_p2 = scmp.lt.s32.totalorder %s65_s4, %s65_s4 }
   0xc   :  { %p72_p3 = por %p71_p2, %p70_p1 }
   0xe   :  { %p73_p4 = pnand %p72_p3, %p66_p0 }
  0x97   :  { %v29_v8 = vpop.xlane.xlu0 %28 }
  0x98   :  { %v31_v9 = vmul.f32 0.015625, %v29_v8 }
  0x9a   :  { %v32_v11 = vadd.f32 1e-06, %v31_v9 }
  0x9c   :  { %63 = vrsqrt.f32 %v32_v11 }
  0xa6   :  { %v64_v17 = vpop.eup %63 }
  0xa7   :  { %v34_v18 = vmul.f32 %v64_v17, %v21_v4 }
  0xa9   :  { %v41_v19 = vmul.f32 %v40_v16, %v34_v18 }
  0xab   :  { %v42_v20 = vpack.c.bf16 %v41_v19, %v41_v19 }
  0xad   :  { %43 = vst.msk [vmem:[#allocation2] sm:$0xf] %vm23_vm1, %v42_v20 }
  0xae   :  { %76 = shalt.err (!%p73_p4)
}
  0xaf   :  { %s77_s24 = scalar_lea.hbm %s144_s3, 64 }
  0xb0   :  { %p78_p5 = scmp.ne.s32.totalorder %s144_s3, %s77_s24  ;;  %p81_p6 = scmp.lt.u32.totalorder %s77_s24, %s144_s3 }
  0xb2   :  { %p83_p7 = pnand %p81_p6, %p78_p5 }
  0xb4   :  { %86 = shalt.err (!%p83_p7)
}
  0xb5   :  { %53 = dma.vmem_to_hbm [thread:$0]  %s51_s22, 64, %s144_s3, [#allocation3]  }
  0xb6   :  { %87 = dma.done.wait [#allocation3], 64  }
  0xb7   :  { %88 = vsyncadd [#allocation3], 4294967232 }
  0xb8   :  { %61 = vsyncpa [#allocation3], 1 }

</bundles_post_ra>
